<compile_context>
chip_gen: v5e
topology: v5e:2x2
jax: 0.10.0
libtpu: 0.0.40
codegen_flags: <defaults>
</compile_context>

<pallas_src>
import functools
import math

import jax
import jax.numpy as jnp
from jax.experimental import pallas as pl
from jax.experimental.pallas import tpu as pltpu

_INV_SQRT_2PI = 1.0 / math.sqrt(2.0 * math.pi)


def _vmem_capacity_bytes():
    try:
        cap = getattr(pltpu.get_tpu_info(), "vmem_capacity_bytes", None)
        if cap:
            return int(cap)
    except Exception:
        pass
    return 64 * 1024 * 1024            # conservative (v7x-class) fallback


_VMEM_CAP = _vmem_capacity_bytes()
# Leave headroom for compiler-internal scratch: 64 MiB on v5e/v6e, 48 MiB on 64 MiB parts.
_VMEM_LIMIT = min(_VMEM_CAP * 3 // 4, 64 * 1024 * 1024)
# Anomaly q-tile: 128 on 128 MiB-VMEM parts (matches the v5e MXU; v6e can try 256),
# 64 on 64 MiB-class parts so the fused-head tile fits the smaller budget.
_DEFAULT_BLOCK_Q = 128 if _VMEM_CAP >= 96 * 1024 * 1024 else 64
_DEFAULT_BLOCK_N = 256                 # freq-branch token tile
_DEFAULT_BLOCK_M = 512                 # row tile for the projection matmuls


# ----------------------------------------------------------------------------
# M-tiled linear kernels (weights resident, bf16 MXU inputs, f32 accumulation).
# ----------------------------------------------------------------------------
def _linear_kernel(x_ref, w_ref, b_ref, o_ref):
    acc = jnp.dot(x_ref[...].astype(jnp.bfloat16), w_ref[...],
                  preferred_element_type=jnp.float32) + b_ref[...]
    o_ref[...] = acc.astype(o_ref.dtype)


def _linear_nobias_kernel(x_ref, w_ref, o_ref):
    o_ref[...] = jnp.dot(x_ref[...].astype(jnp.bfloat16), w_ref[...],
                         preferred_element_type=jnp.float32).astype(o_ref.dtype)


def pallas_linear(x2d, w_bf16, b=None, *, out_dtype=jnp.float32,
                  block_m=_DEFAULT_BLOCK_M):
    """x2d: (M, Cin); w_bf16: (Cin, Cout) bf16 (pre-cast); b: (1, Cout) f32 or None."""
    M, Cin = x2d.shape
    Cout = w_bf16.shape[1]
    tm = M if M <= block_m else block_m
    grid = (pl.cdiv(M, tm),)
    x_spec = pl.BlockSpec((tm, Cin), lambda i: (i, 0))
    w_spec = pl.BlockSpec((Cin, Cout), lambda i: (0, 0))     # resident across row tiles
    o_spec = pl.BlockSpec((tm, Cout), lambda i: (i, 0))
    cp = pltpu.CompilerParams(dimension_semantics=("parallel",),
                              vmem_limit_bytes=_VMEM_LIMIT)
    if b is None:
        return pl.pallas_call(
            _linear_nobias_kernel,
            out_shape=jax.ShapeDtypeStruct((M, Cout), out_dtype),
            grid=grid, in_specs=[x_spec, w_spec], out_specs=o_spec,
            compiler_params=cp)(x2d, w_bf16)
    return pl.pallas_call(
        _linear_kernel,
        out_shape=jax.ShapeDtypeStruct((M, Cout), out_dtype),
        grid=grid,
        in_specs=[x_spec, w_spec, pl.BlockSpec((1, Cout), lambda i: (0, 0))],
        out_specs=o_spec, compiler_params=cp)(x2d, w_bf16, b)


# ----------------------------------------------------------------------------
# Fused series K/V + sigma projection (single pass over x_series).
# series_q of the reference is never consumed, so its columns are skipped.
# ----------------------------------------------------------------------------
def _series_kv_sigma_kernel(x_ref, wkv_ref, wsig_ref, bsig_ref, kv_ref, sig_ref):
    xb = x_ref[...].astype(jnp.bfloat16)
    kv_ref[...] = jnp.dot(xb, wkv_ref[...],
                          preferred_element_type=jnp.float32).astype(kv_ref.dtype)
    sig_ref[...] = jnp.dot(xb, wsig_ref[...],
                           preferred_element_type=jnp.float32) + bsig_ref[...]


def series_kv_sigma_projection(x2d, w_kv, w_sig, b_sig, *, block_m=_DEFAULT_BLOCK_M):
    M, C = x2d.shape
    kv_out = w_kv.shape[1]
    H = w_sig.shape[1]
    tm = M if M <= block_m else block_m
    return pl.pallas_call(
        _series_kv_sigma_kernel,
        out_shape=(jax.ShapeDtypeStruct((M, kv_out), jnp.bfloat16),   # K|V, bf16 HBM path
                   jax.ShapeDtypeStruct((M, H), jnp.float32)),        # sigma, f32 (tiny)
        grid=(pl.cdiv(M, tm),),
        in_specs=[pl.BlockSpec((tm, C), lambda i: (i, 0)),
                  pl.BlockSpec((C, kv_out), lambda i: (0, 0)),
                  pl.BlockSpec((C, H), lambda i: (0, 0)),
                  pl.BlockSpec((1, H), lambda i: (0, 0))],
        out_specs=(pl.BlockSpec((tm, kv_out), lambda i: (i, 0)),
                   pl.BlockSpec((tm, H), lambda i: (i, 0))),
        compiler_params=pltpu.CompilerParams(dimension_semantics=("parallel",),
                                             vmem_limit_bytes=_VMEM_LIMIT),
    )(x2d, w_kv, w_sig, b_sig)


# ----------------------------------------------------------------------------
# Inner "anomaly" attention: one batch (all heads) per grid step, q-tiled.
#   series = softmax((q @ k^T)/sqrt(E));  prior = N(|i-j|; 0, sigma)
#   out    = concat_h(series_h @ v_h) @ W_proj + b_proj   (fused, lane-dense (tq,C))
# ----------------------------------------------------------------------------
def _anomaly_kernel(q_ref, k_ref, v_ref, sig_ref, wp_ref, bp_ref,
                    out_ref, series_ref, prior_ref, *, scale):
    q = q_ref[0]                        # (H, tq, E) bf16
    k = k_ref[0]                        # (H, N,  E) bf16
    v = v_ref[0]                        # (H, N,  E) bf16
    H, tq, _ = q.shape
    N = k.shape[1]

    scores = jnp.einsum("hqe,hse->hqs", q, k,
                        preferred_element_type=jnp.float32) * scale
    m = jnp.max(scores, axis=-1, keepdims=True)
    e = jnp.exp(scores - m)
    series = e * pl.reciprocal(jnp.sum(e, axis=-1, keepdims=True), approx=True)
    series_ref[0] = series.astype(series_ref.dtype)

    # Gaussian prior; sigma already transformed (wrapper, f32).  Distances generated
    # in-kernel; exact 1/sigma (approx error would be amplified by dist^2 in the exp).
    sig = sig_ref[0]                    # (H, tq, 1) f32
    inv_sig = 1.0 / sig
    rows = jax.lax.broadcasted_iota(jnp.int32, (tq, N), 0) + pl.program_id(1) * tq
    cols = jax.lax.broadcasted_iota(jnp.int32, (tq, N), 1)
    dist = (rows - cols).astype(jnp.float32)
    neg_half_d2 = -0.5 * dist * dist
    prior = (_INV_SQRT_2PI * inv_sig) * jnp.exp(
        neg_half_d2[None, :, :] * (inv_sig * inv_sig))
    prior_ref[0] = prior.astype(prior_ref.dtype)

    # Attention output + fused series_proj: concat heads along lanes -> one full-width
    # (tq, C) @ (C, C) MXU matmul instead of H under-filled E-deep matmuls.
    vout = jnp.einsum("hqs,hse->hqe", series.astype(jnp.bfloat16), v,
                      preferred_element_type=jnp.float32)            # (H, tq, E)
    v_cat = jnp.concatenate([vout[h] for h in range(H)],
                            axis=-1).astype(jnp.bfloat16)            # (tq, H*E)
    out_ref[0] = jnp.dot(v_cat, wp_ref[...],
                         preferred_element_type=jnp.float32) + bp_ref[...]


def anomaly_attention(q, k, v, sig, w_proj, b_proj, *, scale,
                      block_q=_DEFAULT_BLOCK_Q, assoc_dtype=jnp.bfloat16):
    """q,k,v: (B,H,N,E) bf16; sig: (B,H,N,1) f32 (already transformed);
    w_proj: (C,C) bf16; b_proj: (1,C) f32."""
    B, H, N, E = q.shape
    C = H * E
    tq = N if N <= block_q else block_q
    kern = functools.partial(_anomaly_kernel, scale=scale)
    return pl.pallas_call(
        kern,
        out_shape=(
            jax.ShapeDtypeStruct((B, N, C), jnp.float32),      # series_proj(attn @ V)
            jax.ShapeDtypeStruct((B, H, N, N), assoc_dtype),   # series association
            jax.ShapeDtypeStruct((B, H, N, N), assoc_dtype),   # prior association
        ),
        grid=(B, pl.cdiv(N, tq)),
        in_specs=[
            pl.BlockSpec((1, H, tq, E), lambda b, qi: (b, 0, qi, 0)),
            pl.BlockSpec((1, H, N, E), lambda b, qi: (b, 0, 0, 0)),   # K resident over qi
            pl.BlockSpec((1, H, N, E), lambda b, qi: (b, 0, 0, 0)),   # V resident over qi
            pl.BlockSpec((1, H, tq, 1), lambda b, qi: (b, 0, qi, 0)),
            pl.BlockSpec((C, C), lambda b, qi: (0, 0)),               # proj weight resident
            pl.BlockSpec((1, C), lambda b, qi: (0, 0)),
        ],
        out_specs=(
            pl.BlockSpec((1, tq, C), lambda b, qi: (b, qi, 0)),
            pl.BlockSpec((1, H, tq, N), lambda b, qi: (b, 0, qi, 0)),
            pl.BlockSpec((1, H, tq, N), lambda b, qi: (b, 0, qi, 0)),
        ),
        compiler_params=pltpu.CompilerParams(
            dimension_semantics=("parallel", "parallel"),
            vmem_limit_bytes=_VMEM_LIMIT),
    )(q, k, v, sig, w_proj, b_proj)


# ----------------------------------------------------------------------------
# Frequency branch: per-token attention over the HEAD axis (un-transposed, as in the
# reference).  Tiled over tokens; lane-dense (tn, C) store (channel order c = h*E + e).
# ----------------------------------------------------------------------------
def _freq_attn_kernel(q_ref, k_ref, v_ref, o_ref, *, scale):
    q = q_ref[0]                        # (tn, H, E) bf16
    k = k_ref[0]
    v = v_ref[0]
    H = q.shape[1]
    attn = jnp.einsum("nhe,nge->nhg", q, k,
                      preferred_element_type=jnp.float32) * scale
    m = jnp.max(attn, axis=-1, keepdims=True)
    e = jnp.exp(attn - m)
    attn = e * pl.reciprocal(jnp.sum(e, axis=-1, keepdims=True), approx=True)
    # freq_attn_drop is identity (attn_drop=0.0 / eval)
    o = jnp.einsum("nhg,nge->nhe", attn.astype(jnp.bfloat16), v,
                   preferred_element_type=jnp.float32)               # (tn, H, E)
    o_ref[0] = jnp.concatenate([o[:, h, :] for h in range(H)],
                               axis=-1).astype(o_ref.dtype)          # (tn, C)


def freq_attention(q, k, v, *, scale, block_n=_DEFAULT_BLOCK_N):
    """q,k,v: (B,N,H,E) bf16 -> (B,N,H*E) bf16, natural channel order."""
    B, N, H, E = q.shape
    C = H * E
    tn = N if N <= block_n else block_n
    kern = functools.partial(_freq_attn_kernel, scale=scale)
    in_spec = pl.BlockSpec((1, tn, H, E), lambda b, ni: (b, ni, 0, 0))
    return pl.pallas_call(
        kern,
        out_shape=jax.ShapeDtypeStruct((B, N, C), jnp.bfloat16),
        grid=(B, pl.cdiv(N, tn)),
        in_specs=[in_spec, in_spec, in_spec],
        out_specs=pl.BlockSpec((1, tn, C), lambda b, ni: (b, ni, 0)),
        compiler_params=pltpu.CompilerParams(
            dimension_semantics=("parallel", "parallel"),
            vmem_limit_bytes=_VMEM_LIMIT),
    )(q, k, v)


# ----------------------------------------------------------------------------
# Parameters & full forward pass.
# ----------------------------------------------------------------------------
def init_params(key, d_model, num_heads):
    """Raw f32 parameters; weight convention is (in, out), i.e. y = x @ W + b."""
    ks = jax.random.split(key, 8)
    s = 0.1
    return {
        "series_qkv_w":  s * jax.random.normal(ks[0], (d_model, 3 * d_model), jnp.float32),
        "freq_qkv_w":    s * jax.random.normal(ks[1], (d_model, 3 * d_model), jnp.float32),
        "sigma_w":       s * jax.random.normal(ks[2], (d_model, num_heads), jnp.float32),
        "sigma_b":       s * jax.random.normal(ks[3], (num_heads,), jnp.float32),
        "series_proj_w": s * jax.random.normal(ks[4], (d_model, d_model), jnp.float32),
        "series_proj_b": s * jax.random.normal(ks[5], (d_model,), jnp.float32),
        "freq_proj_w":   s * jax.random.normal(ks[6], (d_model, d_model), jnp.float32),
        "freq_proj_b":   s * jax.random.normal(ks[7], (d_model,), jnp.float32),
    }


def prepare_params(raw, num_heads):
    """One-time (outside the per-call path) bf16 cast + K/V-only slice of series_qkv
    (series_q is never used by the reference forward) + bias reshapes."""
    C = raw["series_qkv_w"].shape[0]
    H = num_heads
    return {
        "series_kv_w":   raw["series_qkv_w"][:, C:].astype(jnp.bfloat16),    # (C, 2C)
        "sigma_w":       raw["sigma_w"].astype(jnp.bfloat16),                # (C, H)
        "sigma_b":       raw["sigma_b"].reshape(1, H).astype(jnp.float32),
        "freq_qkv_w":    raw["freq_qkv_w"].astype(jnp.bfloat16),             # (C, 3C)
        "series_proj_w": raw["series_proj_w"].astype(jnp.bfloat16),          # (C, C)
        "series_proj_b": raw["series_proj_b"].reshape(1, C).astype(jnp.float32),
        "freq_proj_w":   raw["freq_proj_w"].astype(jnp.bfloat16),
        "freq_proj_b":   raw["freq_proj_b"].reshape(1, C).astype(jnp.float32),
    }


def cross_attention_forward(x_freq, x_series, params, num_heads, *,
                            broadcast_sigma=True,
                            block_q=_DEFAULT_BLOCK_Q,
                            block_n=_DEFAULT_BLOCK_N,
                            block_m=_DEFAULT_BLOCK_M):
    B, N, C = x_series.shape
    H = num_heads
    assert C % H == 0, "dim should be divisible by num_heads"
    E = C // H
    scale = 1.0 / math.sqrt(E)           # == head_dim ** -0.5 (both branches)

    xs2 = x_series.reshape(B * N, C)
    xf2 = x_freq.reshape(B * N, C)

    # --- projections (bf16 HBM path; sigma kept f32).  qkv_bias=False.
    kv2, sig2 = series_kv_sigma_projection(
        xs2, params["series_kv_w"], params["sigma_w"], params["sigma_b"],
        block_m=block_m)
    f_qkv = pallas_linear(xf2, params["freq_qkv_w"], None,
                          out_dtype=jnp.bfloat16, block_m=block_m)

    kv = kv2.reshape(B, N, 2, H, E)
    series_k, series_v = kv[:, :, 0], kv[:, :, 1]              # (B,N,H,E) bf16
    freq_qkv = f_qkv.reshape(B, N, 3, H, E)
    freq_q, freq_k, freq_v = freq_qkv[:, :, 0], freq_qkv[:, :, 1], freq_qkv[:, :, 2]

    # --- sigma transform (tiny, f32): sigmoid(5x) + 1e-5 -> 3**x - 1, on the column.
    sig_col = jnp.transpose(sig2.reshape(B, N, H), (0, 2, 1))    # (B,H,N) f32
    sig_col = jax.nn.sigmoid(sig_col * 5.0) + 1e-5
    sig_col = jnp.power(3.0, sig_col) - 1.0

    # --- inner (anomaly) attention: queries from freq_q, keys/values from series.
    # Heads-major layout plumbing on bf16 (half the transpose bytes of an f32 path).
    q_t = jnp.transpose(freq_q, (0, 2, 1, 3))                    # (B,H,N,E)
    k_t = jnp.transpose(series_k, (0, 2, 1, 3))
    v_t = jnp.transpose(series_v, (0, 2, 1, 3))

    series_proj, series_asso, prior_asso = anomaly_attention(
        q_t, k_t, v_t, sig_col[..., None],
        params["series_proj_w"], params["series_proj_b"],
        scale=scale, block_q=block_q)

    # Reference repeats sigma to (B,H,N,N); that broadcast carries no information, so
    # broadcast_sigma=False returns the (B,H,N,1) column and skips the N^2 HBM write.
    sigma_out = (jnp.broadcast_to(sig_col[..., None], (B, H, N, N))
                 if broadcast_sigma else sig_col[..., None])

    # --- frequency branch: per-token attention over the head axis.
    freq_nat = freq_attention(freq_q, freq_k, freq_v, scale=scale, block_n=block_n)
    # Reference: (attn @ v).transpose(1,2).reshape(B,N,C) is a token/head data scramble;
    # reproduced as XLA layout plumbing (it prevents fusing freq_proj in-kernel).
    # TODO(synk): fuse freq_proj into the freq kernel if the scramble is ever removed.
    x_freq_out = jnp.transpose(freq_nat.reshape(B, N, H, E),
                               (0, 2, 1, 3)).reshape(B * N, C)
    freq_proj = pallas_linear(x_freq_out, params["freq_proj_w"],
                              params["freq_proj_b"], out_dtype=jnp.float32,
                              block_m=block_m).reshape(B, N, C)

    return series_proj, freq_proj, series_asso, prior_asso, sigma_out


# ----------------------------------------------------------------------------
# Pure-JAX f32 reference (mirrors the PyTorch module, eval mode, mask_flag=False).
# ----------------------------------------------------------------------------
def _reference_forward(x_freq, x_series, raw, num_heads):
    B, N, C = x_series.shape
    H = num_heads
    E = C // H
    scale = 1.0 / math.sqrt(E)

    s_qkv = (x_series @ raw["series_qkv_w"]).reshape(B, N, 3, H, E)
    f_qkv = (x_freq @ raw["freq_qkv_w"]).reshape(B, N, 3, H, E)
    s_k, s_v = s_qkv[:, :, 1], s_qkv[:, :, 2]
    f_q, f_k, f_v = f_qkv[:, :, 0], f_qkv[:, :, 1], f_qkv[:, :, 2]
    sigma = x_series @ raw["sigma_w"] + raw["sigma_b"]            # (B,N,H)

    scores = jnp.einsum("blhe,bshe->bhls", f_q, s_k) * scale
    series = jax.nn.softmax(scores, axis=-1)
    sig = jnp.transpose(sigma, (0, 2, 1))
    sig = jax.nn.sigmoid(sig * 5.0) + 1e-5
    sig = jnp.power(3.0, sig) - 1.0
    sig_b = jnp.broadcast_to(sig[..., None], (B, H, N, N))
    idx = jnp.arange(N, dtype=jnp.float32)
    dist = jnp.abs(idx[:, None] - idx[None, :])
    prior = (1.0 / (math.sqrt(2.0 * math.pi) * sig_b)
             * jnp.exp(-(dist ** 2) / (2.0 * sig_b ** 2)))
    V = jnp.einsum("bhls,bshd->blhd", series, s_v).reshape(B, N, C)
    series_out = V @ raw["series_proj_w"] + raw["series_proj_b"]

    attn = jnp.einsum("bnhe,bnge->bnhg", f_q, f_k) * scale
    attn = jax.nn.softmax(attn, axis=-1)
    o = jnp.einsum("bnhg,bnge->bnhe", attn, f_v)
    xf = jnp.transpose(o, (0, 2, 1, 3)).reshape(B, N, C)
    freq_out = xf @ raw["freq_proj_w"] + raw["freq_proj_b"]
    return series_out, freq_out, series, prior, sig_b


def _assert_close(name, got, want, atol, rtol):
    got = jnp.asarray(got, jnp.float32)
    want = jnp.asarray(want, jnp.float32)
    excess = jnp.max(jnp.abs(got - want) - (atol + rtol * jnp.abs(want)))
    assert bool(excess <= 0.0), f"{name} mismatch: worst excess {float(excess):.3e}"


if __name__ == "__main__":
    B, N, C, H = 2, 8, 32, 8
    key = jax.random.PRNGKey(0)
    k1, k2, kp = jax.random.split(key, 3)
    x_freq = jax.random.normal(k1, (B, N, C), jnp.float32)
    x_series = jax.random.normal(k2, (B, N, C), jnp.float32)
    raw_params = init_params(kp, C, H)
    params = prepare_params(raw_params, H)       # pre-cast / pre-sliced once, outside jit

    fwd = jax.jit(cross_attention_forward, static_argnums=(3,))
    outs = fwd(x_freq, x_series, params, H)
    jax.block_until_ready(outs)

    s_out, f_out, series_asso, prior_asso, sigma_out = outs
    assert s_out.shape == (B, N, C) and s_out.dtype == jnp.float32
    assert f_out.shape == (B, N, C) and f_out.dtype == jnp.float32
    assert series_asso.shape == (B, H, N, N)
    assert prior_asso.shape == (B, H, N, N)
    assert sigma_out.shape == (B, H, N, N)
    for o in (s_out, f_out, series_asso, prior_asso, sigma_out):
        assert bool(jnp.all(jnp.isfinite(o.astype(jnp.float32))))

    # Numerical smoke test against the pure-JAX f32 reference (bf16 HBM path + approx
    # softmax reciprocals -> loose tolerances).
    r_s, r_f, r_series, r_prior, r_sigma = _reference_forward(
        x_freq, x_series, raw_params, H)
    _assert_close("series_proj", s_out, r_s, atol=0.05, rtol=0.05)
    _assert_close("freq_proj", f_out, r_f, atol=0.05, rtol=0.05)
    _assert_close("series_asso", series_asso, r_series, atol=0.02, rtol=0.05)
    _assert_close("prior_asso", prior_asso, r_prior, atol=0.1, rtol=0.1)
    _assert_close("sigma", sigma_out, r_sigma, atol=0.02, rtol=0.05)

    print("KERNEL_OK")
</pallas_src>

<mosaic_0001>
module attributes {stable_mosaic.version = 11 : i64} {
  func.func @_series_kv_sigma_kernel(%arg0: i32, %arg1: memref<16x32xf32, #tpu.memory_space<vmem>>, %arg2: memref<32x64xbf16, #tpu.memory_space<vmem>>, %arg3: memref<32x8xbf16, #tpu.memory_space<vmem>>, %arg4: memref<1x8xf32, #tpu.memory_space<vmem>>, %arg5: memref<16x64xbf16, #tpu.memory_space<vmem>>, %arg6: memref<16x8xf32, #tpu.memory_space<vmem>>) attributes {dimension_semantics = [#tpu.dimension_semantics<parallel>], iteration_bounds = array<i64: 1>, scalar_prefetch = 0 : i64, scratch_operands = 0 : i64, tpu.core_type = #tpu.core_type<tc>, window_params = [{transform_indices = @transform_0, window_bounds = array<i64: 16, 32>}, {pipeline_mode = #tpu.pipeline_mode<synchronous>, transform_indices = @transform_1, window_bounds = array<i64: 32, 64>}, {pipeline_mode = #tpu.pipeline_mode<synchronous>, transform_indices = @transform_2, window_bounds = array<i64: 32, 8>}, {pipeline_mode = #tpu.pipeline_mode<synchronous>, transform_indices = @transform_3, window_bounds = array<i64: 1, 8>}, {transform_indices = @transform_4, window_bounds = array<i64: 16, 64>}, {transform_indices = @transform_5, window_bounds = array<i64: 16, 8>}]} {
    %c0 = arith.constant 0 : index
    %c0_0 = arith.constant 0 : index
    %0 = vector.load %arg1[%c0, %c0_0] : memref<16x32xf32, #tpu.memory_space<vmem>>, vector<16x32xf32>
    %1 = arith.truncf %0 : vector<16x32xf32> to vector<16x32xbf16>
    %c0_1 = arith.constant 0 : index
    %c0_2 = arith.constant 0 : index
    %2 = vector.load %arg2[%c0_1, %c0_2] : memref<32x64xbf16, #tpu.memory_space<vmem>>, vector<32x64xbf16>
    %cst = arith.constant dense<0.000000e+00> : vector<16x64xf32>
    %3 = tpu.matmul %1, %2, %cst {dimension_numbers = #tpu.dot_dimension_numbers<[1], [0], [0], [1], [0, 0, 1, 1], [], []>} : vector<16x32xbf16>, vector<32x64xbf16>, vector<16x64xf32> -> vector<16x64xf32>
    %4 = arith.truncf %3 : vector<16x64xf32> to vector<16x64xbf16>
    %c0_3 = arith.constant 0 : index
    %c0_4 = arith.constant 0 : index
    %5 = vector.load %arg5[%c0_3, %c0_4] : memref<16x64xbf16, #tpu.memory_space<vmem>>, vector<16x64xbf16>
    tpu.vector_store %arg5[%c0_3, %c0_4], %4 {strides = array<i32>} : memref<16x64xbf16, #tpu.memory_space<vmem>>, vector<16x64xbf16>,
    %c0_5 = arith.constant 0 : index
    %c0_6 = arith.constant 0 : index
    %6 = vector.load %arg3[%c0_5, %c0_6] : memref<32x8xbf16, #tpu.memory_space<vmem>>, vector<32x8xbf16>
    %cst_7 = arith.constant dense<0.000000e+00> : vector<16x8xf32>
    %7 = tpu.matmul %1, %6, %cst_7 {dimension_numbers = #tpu.dot_dimension_numbers<[1], [0], [0], [1], [0, 0, 1, 1], [], []>} : vector<16x32xbf16>, vector<32x8xbf16>, vector<16x8xf32> -> vector<16x8xf32>
    %c0_8 = arith.constant 0 : index
    %c0_9 = arith.constant 0 : index
    %8 = vector.load %arg4[%c0_8, %c0_9] : memref<1x8xf32, #tpu.memory_space<vmem>>, vector<1x8xf32>
    %9 = vector.broadcast %8 : vector<1x8xf32> to vector<16x8xf32>
    %10 = arith.addf %7, %9 : vector<16x8xf32>
    %c0_10 = arith.constant 0 : index
    %c0_11 = arith.constant 0 : index
    %11 = vector.load %arg6[%c0_10, %c0_11] : memref<16x8xf32, #tpu.memory_space<vmem>>, vector<16x8xf32>
    tpu.vector_store %arg6[%c0_10, %c0_11], %10 {strides = array<i32>} : memref<16x8xf32, #tpu.memory_space<vmem>>, vector<16x8xf32>,
    return
  }
  func.func @transform_0(%arg0: i32) -> (i32, i32) {
    %c0_i32 = arith.constant 0 : i32
    %c0_i32_0 = arith.constant 0 : i32
    return %arg0, %c0_i32 : i32, i32
  }
  func.func @transform_1(%arg0: i32) -> (i32, i32) {
    %c0_i32 = arith.constant 0 : i32
    %c0_i32_0 = arith.constant 0 : i32
    %c0_i32_1 = arith.constant 0 : i32
    return %c0_i32, %c0_i32_0 : i32, i32
  }
  func.func @transform_2(%arg0: i32) -> (i32, i32) {
    %c0_i32 = arith.constant 0 : i32
    %c0_i32_0 = arith.constant 0 : i32
    %c0_i32_1 = arith.constant 0 : i32
    return %c0_i32, %c0_i32_0 : i32, i32
  }
  func.func @transform_3(%arg0: i32) -> (i32, i32) {
    %c0_i32 = arith.constant 0 : i32
    %c0_i32_0 = arith.constant 0 : i32
    %c0_i32_1 = arith.constant 0 : i32
    return %c0_i32, %c0_i32_0 : i32, i32
  }
  func.func @transform_4(%arg0: i32) -> (i32, i32) {
    %c0_i32 = arith.constant 0 : i32
    %c0_i32_0 = arith.constant 0 : i32
    return %arg0, %c0_i32 : i32, i32
  }
  func.func @transform_5(%arg0: i32) -> (i32, i32) {
    %c0_i32 = arith.constant 0 : i32
    %c0_i32_0 = arith.constant 0 : i32
    return %arg0, %c0_i32 : i32, i32
  }
}

module attributes {stable_mosaic.version = 11 : i64} {
  func.func @_linear_nobias_kernel(%arg0: i32, %arg1: memref<16x32xf32, #tpu.memory_space<vmem>>, %arg2: memref<32x96xbf16, #tpu.memory_space<vmem>>, %arg3: memref<16x96xbf16, #tpu.memory_space<vmem>>) attributes {dimension_semantics = [#tpu.dimension_semantics<parallel>], iteration_bounds = array<i64: 1>, scalar_prefetch = 0 : i64, scratch_operands = 0 : i64, tpu.core_type = #tpu.core_type<tc>, window_params = [{transform_indices = @transform_0, window_bounds = array<i64: 16, 32>}, {pipeline_mode = #tpu.pipeline_mode<synchronous>, transform_indices = @transform_1, window_bounds = array<i64: 32, 96>}, {transform_indices = @transform_2, window_bounds = array<i64: 16, 96>}]} {
    %c0 = arith.constant 0 : index
    %c0_0 = arith.constant 0 : index
    %0 = vector.load %arg1[%c0, %c0_0] : memref<16x32xf32, #tpu.memory_space<vmem>>, vector<16x32xf32>
    %1 = arith.truncf %0 : vector<16x32xf32> to vector<16x32xbf16>
    %c0_1 = arith.constant 0 : index
    %c0_2 = arith.constant 0 : index
    %2 = vector.load %arg2[%c0_1, %c0_2] : memref<32x96xbf16, #tpu.memory_space<vmem>>, vector<32x96xbf16>
    %cst = arith.constant dense<0.000000e+00> : vector<16x96xf32>
    %3 = tpu.matmul %1, %2, %cst {dimension_numbers = #tpu.dot_dimension_numbers<[1], [0], [0], [1], [0, 0, 1, 1], [], []>} : vector<16x32xbf16>, vector<32x96xbf16>, vector<16x96xf32> -> vector<16x96xf32>
    %4 = arith.truncf %3 : vector<16x96xf32> to vector<16x96xbf16>
    %c0_3 = arith.constant 0 : index
    %c0_4 = arith.constant 0 : index
    %5 = vector.load %arg3[%c0_3, %c0_4] : memref<16x96xbf16, #tpu.memory_space<vmem>>, vector<16x96xbf16>
    tpu.vector_store %arg3[%c0_3, %c0_4], %4 {strides = array<i32>} : memref<16x96xbf16, #tpu.memory_space<vmem>>, vector<16x96xbf16>,
    return
  }
  func.func @transform_0(%arg0: i32) -> (i32, i32) {
    %c0_i32 = arith.constant 0 : i32
    %c0_i32_0 = arith.constant 0 : i32
    return %arg0, %c0_i32 : i32, i32
  }
  func.func @transform_1(%arg0: i32) -> (i32, i32) {
    %c0_i32 = arith.constant 0 : i32
    %c0_i32_0 = arith.constant 0 : i32
    %c0_i32_1 = arith.constant 0 : i32
    return %c0_i32, %c0_i32_0 : i32, i32
  }
  func.func @transform_2(%arg0: i32) -> (i32, i32) {
    %c0_i32 = arith.constant 0 : i32
    %c0_i32_0 = arith.constant 0 : i32
    return %arg0, %c0_i32 : i32, i32
  }
}

module attributes {stable_mosaic.version = 11 : i64} {
  func.func @_freq_attn_kernel(%arg0: i32, %arg1: i32, %arg2: memref<1x8x8x4xbf16, #tpu.memory_space<vmem>>, %arg3: memref<1x8x8x4xbf16, #tpu.memory_space<vmem>>, %arg4: memref<1x8x8x4xbf16, #tpu.memory_space<vmem>>, %arg5: memref<1x8x32xbf16, #tpu.memory_space<vmem>>) attributes {dimension_semantics = [#tpu.dimension_semantics<parallel>, #tpu.dimension_semantics<parallel>], iteration_bounds = array<i64: 2, 1>, scalar_prefetch = 0 : i64, scratch_operands = 0 : i64, tpu.core_type = #tpu.core_type<tc>, window_params = [{transform_indices = @transform_0, window_bounds = array<i64: 1, 8, 8, 4>}, {transform_indices = @transform_1, window_bounds = array<i64: 1, 8, 8, 4>}, {transform_indices = @transform_2, window_bounds = array<i64: 1, 8, 8, 4>}, {transform_indices = @transform_3, window_bounds = array<i64: 1, 8, 32>}]} {
    %c0 = arith.constant 0 : index
    %c0_0 = arith.constant 0 : index
    %c0_1 = arith.constant 0 : index
    %c0_2 = arith.constant 0 : index
    %0 = vector.load %arg2[%c0, %c0_0, %c0_1, %c0_2] : memref<1x8x8x4xbf16, #tpu.memory_space<vmem>>, vector<1x8x8x4xbf16>
    %1 = vector.shape_cast %0 : vector<1x8x8x4xbf16> to vector<8x8x4xbf16>
    %c0_3 = arith.constant 0 : index
    %c0_4 = arith.constant 0 : index
    %c0_5 = arith.constant 0 : index
    %c0_6 = arith.constant 0 : index
    %2 = vector.load %arg3[%c0_3, %c0_4, %c0_5, %c0_6] : memref<1x8x8x4xbf16, #tpu.memory_space<vmem>>, vector<1x8x8x4xbf16>
    %3 = vector.shape_cast %2 : vector<1x8x8x4xbf16> to vector<8x8x4xbf16>
    %c0_7 = arith.constant 0 : index
    %c0_8 = arith.constant 0 : index
    %c0_9 = arith.constant 0 : index
    %c0_10 = arith.constant 0 : index
    %4 = vector.load %arg4[%c0_7, %c0_8, %c0_9, %c0_10] : memref<1x8x8x4xbf16, #tpu.memory_space<vmem>>, vector<1x8x8x4xbf16>
    %5 = vector.shape_cast %4 : vector<1x8x8x4xbf16> to vector<8x8x4xbf16>
    "tpu.trace_start"() <{level = 10 : i32, message = "nhe,nge->nhg"}> : () -> ()
    %cst = arith.constant dense<0.000000e+00> : vector<8x8x8xf32>
    %6 = tpu.matmul %1, %3, %cst {dimension_numbers = #tpu.dot_dimension_numbers<[2], [2], [1], [1], [0, 0, 0, 1, 1, 1], [0], [0]>} : vector<8x8x4xbf16>, vector<8x8x4xbf16>, vector<8x8x8xf32> -> vector<8x8x8xf32>
    "tpu.trace_stop"() : () -> ()
    %cst_11 = arith.constant 5.000000e-01 : f32
    %7 = vector.broadcast %cst_11 : f32 to vector<8x8x8xf32>
    %8 = arith.mulf %6, %7 : vector<8x8x8xf32>
    %cst_12 = arith.constant dense<0xFF800000> : vector<8x8xf32>
    %9 = vector.multi_reduction <maximumf>, %8, %cst_12 [2] : vector<8x8x8xf32> to vector<8x8xf32>
    %10 = vector.shape_cast %9 : vector<8x8xf32> to vector<8x8x1xf32>
    %11 = vector.broadcast %10 : vector<8x8x1xf32> to vector<8x8x8xf32>
    %12 = arith.subf %8, %11 : vector<8x8x8xf32>
    %13 = math.exp %12 : vector<8x8x8xf32>
    %cst_13 = arith.constant dense<0.000000e+00> : vector<8x8xf32>
    %14 = vector.multi_reduction <add>, %13, %cst_13 [2] : vector<8x8x8xf32> to vector<8x8xf32>
    %15 = vector.shape_cast %14 : vector<8x8xf32> to vector<8x8x1xf32>
    %16 = tpu.reciprocal %15 {approx = true} : vector<8x8x1xf32> -> vector<8x8x1xf32>
    %17 = vector.broadcast %16 : vector<8x8x1xf32> to vector<8x8x8xf32>
    %18 = arith.mulf %13, %17 : vector<8x8x8xf32>
    %19 = arith.truncf %18 : vector<8x8x8xf32> to vector<8x8x8xbf16>
    "tpu.trace_start"() <{level = 10 : i32, message = "nhg,nge->nhe"}> : () -> ()
    %cst_14 = arith.constant dense<0.000000e+00> : vector<8x8x4xf32>
    %20 = tpu.matmul %19, %5, %cst_14 {dimension_numbers = #tpu.dot_dimension_numbers<[2], [1], [1], [2], [0, 0, 0, 1, 1, 2], [0], [0]>} : vector<8x8x8xbf16>, vector<8x8x4xbf16>, vector<8x8x4xf32> -> vector<8x8x4xf32>
    "tpu.trace_stop"() : () -> ()
    %21 = vector.extract_strided_slice %20 {offsets = [0, 0, 0], sizes = [8, 1, 4], strides = [1, 1, 1]} : vector<8x8x4xf32> to vector<8x1x4xf32>
    %22 = vector.shape_cast %21 : vector<8x1x4xf32> to vector<8x4xf32>
    %23 = vector.extract_strided_slice %20 {offsets = [0, 1, 0], sizes = [8, 1, 4], strides = [1, 1, 1]} : vector<8x8x4xf32> to vector<8x1x4xf32>
    %24 = vector.shape_cast %23 : vector<8x1x4xf32> to vector<8x4xf32>
    %25 = vector.extract_strided_slice %20 {offsets = [0, 2, 0], sizes = [8, 1, 4], strides = [1, 1, 1]} : vector<8x8x4xf32> to vector<8x1x4xf32>
    %26 = vector.shape_cast %25 : vector<8x1x4xf32> to vector<8x4xf32>
    %27 = vector.extract_strided_slice %20 {offsets = [0, 3, 0], sizes = [8, 1, 4], strides = [1, 1, 1]} : vector<8x8x4xf32> to vector<8x1x4xf32>
    %28 = vector.shape_cast %27 : vector<8x1x4xf32> to vector<8x4xf32>
    %29 = vector.extract_strided_slice %20 {offsets = [0, 4, 0], sizes = [8, 1, 4], strides = [1, 1, 1]} : vector<8x8x4xf32> to vector<8x1x4xf32>
    %30 = vector.shape_cast %29 : vector<8x1x4xf32> to vector<8x4xf32>
    %31 = vector.extract_strided_slice %20 {offsets = [0, 5, 0], sizes = [8, 1, 4], strides = [1, 1, 1]} : vector<8x8x4xf32> to vector<8x1x4xf32>
    %32 = vector.shape_cast %31 : vector<8x1x4xf32> to vector<8x4xf32>
    %33 = vector.extract_strided_slice %20 {offsets = [0, 6, 0], sizes = [8, 1, 4], strides = [1, 1, 1]} : vector<8x8x4xf32> to vector<8x1x4xf32>
    %34 = vector.shape_cast %33 : vector<8x1x4xf32> to vector<8x4xf32>
    %35 = vector.extract_strided_slice %20 {offsets = [0, 7, 0], sizes = [8, 1, 4], strides = [1, 1, 1]} : vector<8x8x4xf32> to vector<8x1x4xf32>
    %36 = vector.shape_cast %35 : vector<8x1x4xf32> to vector<8x4xf32>
    %37 = tpu.concatenate %22, %24, %26, %28, %30, %32, %34, %36 in 1 : vector<8x4xf32>, vector<8x4xf32>, vector<8x4xf32>, vector<8x4xf32>, vector<8x4xf32>, vector<8x4xf32>, vector<8x4xf32>, vector<8x4xf32> -> vector<8x32xf32>
    %38 = arith.truncf %37 : vector<8x32xf32> to vector<8x32xbf16>
    %c0_15 = arith.constant 0 : index
    %c0_16 = arith.constant 0 : index
    %c0_17 = arith.constant 0 : index
    %39 = vector.load %arg5[%c0_15, %c0_16, %c0_17] : memref<1x8x32xbf16, #tpu.memory_space<vmem>>, vector<1x8x32xbf16>
    %40 = vector.shape_cast %39 : vector<1x8x32xbf16> to vector<8x32xbf16>
    %41 = vector.shape_cast %38 : vector<8x32xbf16> to vector<1x8x32xbf16>
    tpu.vector_store %arg5[%c0_15, %c0_16, %c0_17], %41 {strides = array<i32>} : memref<1x8x32xbf16, #tpu.memory_space<vmem>>, vector<1x8x32xbf16>,
    return
  }
  func.func @transform_0(%arg0: i32, %arg1: i32) -> (i32, i32, i32, i32) {
    %c0_i32 = arith.constant 0 : i32
    %c0_i32_0 = arith.constant 0 : i32
    %c0_i32_1 = arith.constant 0 : i32
    return %arg0, %arg1, %c0_i32, %c0_i32_0 : i32, i32, i32, i32
  }
  func.func @transform_1(%arg0: i32, %arg1: i32) -> (i32, i32, i32, i32) {
    %c0_i32 = arith.constant 0 : i32
    %c0_i32_0 = arith.constant 0 : i32
    %c0_i32_1 = arith.constant 0 : i32
    return %arg0, %arg1, %c0_i32, %c0_i32_0 : i32, i32, i32, i32
  }
  func.func @transform_2(%arg0: i32, %arg1: i32) -> (i32, i32, i32, i32) {
    %c0_i32 = arith.constant 0 : i32
    %c0_i32_0 = arith.constant 0 : i32
    %c0_i32_1 = arith.constant 0 : i32
    return %arg0, %arg1, %c0_i32, %c0_i32_0 : i32, i32, i32, i32
  }
  func.func @transform_3(%arg0: i32, %arg1: i32) -> (i32, i32, i32) {
    %c0_i32 = arith.constant 0 : i32
    %c0_i32_0 = arith.constant 0 : i32
    return %arg0, %arg1, %c0_i32 : i32, i32, i32
  }
}

module attributes {stable_mosaic.version = 11 : i64} {
  func.func @_linear_kernel(%arg0: i32, %arg1: memref<16x32xbf16, #tpu.memory_space<vmem>>, %arg2: memref<32x32xbf16, #tpu.memory_space<vmem>>, %arg3: memref<1x32xf32, #tpu.memory_space<vmem>>, %arg4: memref<16x32xf32, #tpu.memory_space<vmem>>) attributes {dimension_semantics = [#tpu.dimension_semantics<parallel>], iteration_bounds = array<i64: 1>, scalar_prefetch = 0 : i64, scratch_operands = 0 : i64, tpu.core_type = #tpu.core_type<tc>, window_params = [{transform_indices = @transform_0, window_bounds = array<i64: 16, 32>}, {pipeline_mode = #tpu.pipeline_mode<synchronous>, transform_indices = @transform_1, window_bounds = array<i64: 32, 32>}, {pipeline_mode = #tpu.pipeline_mode<synchronous>, transform_indices = @transform_2, window_bounds = array<i64: 1, 32>}, {transform_indices = @transform_3, window_bounds = array<i64: 16, 32>}]} {
    %c0 = arith.constant 0 : index
    %c0_0 = arith.constant 0 : index
    %0 = vector.load %arg1[%c0, %c0_0] : memref<16x32xbf16, #tpu.memory_space<vmem>>, vector<16x32xbf16>
    %c0_1 = arith.constant 0 : index
    %c0_2 = arith.constant 0 : index
    %1 = vector.load %arg2[%c0_1, %c0_2] : memref<32x32xbf16, #tpu.memory_space<vmem>>, vector<32x32xbf16>
    %cst = arith.constant dense<0.000000e+00> : vector<16x32xf32>
    %2 = tpu.matmul %0, %1, %cst {dimension_numbers = #tpu.dot_dimension_numbers<[1], [0], [0], [1], [0, 0, 1, 1], [], []>} : vector<16x32xbf16>, vector<32x32xbf16>, vector<16x32xf32> -> vector<16x32xf32>
    %c0_3 = arith.constant 0 : index
    %c0_4 = arith.constant 0 : index
    %3 = vector.load %arg3[%c0_3, %c0_4] : memref<1x32xf32, #tpu.memory_space<vmem>>, vector<1x32xf32>
    %4 = vector.broadcast %3 : vector<1x32xf32> to vector<16x32xf32>
    %5 = arith.addf %2, %4 : vector<16x32xf32>
    %c0_5 = arith.constant 0 : index
    %c0_6 = arith.constant 0 : index
    %6 = vector.load %arg4[%c0_5, %c0_6] : memref<16x32xf32, #tpu.memory_space<vmem>>, vector<16x32xf32>
    tpu.vector_store %arg4[%c0_5, %c0_6], %5 {strides = array<i32>} : memref<16x32xf32, #tpu.memory_space<vmem>>, vector<16x32xf32>,
    return
  }
  func.func @transform_0(%arg0: i32) -> (i32, i32) {
    %c0_i32 = arith.constant 0 : i32
    %c0_i32_0 = arith.constant 0 : i32
    return %arg0, %c0_i32 : i32, i32
  }
  func.func @transform_1(%arg0: i32) -> (i32, i32) {
    %c0_i32 = arith.constant 0 : i32
    %c0_i32_0 = arith.constant 0 : i32
    %c0_i32_1 = arith.constant 0 : i32
    return %c0_i32, %c0_i32_0 : i32, i32
  }
  func.func @transform_2(%arg0: i32) -> (i32, i32) {
    %c0_i32 = arith.constant 0 : i32
    %c0_i32_0 = arith.constant 0 : i32
    %c0_i32_1 = arith.constant 0 : i32
    return %c0_i32, %c0_i32_0 : i32, i32
  }
  func.func @transform_3(%arg0: i32) -> (i32, i32) {
    %c0_i32 = arith.constant 0 : i32
    %c0_i32_0 = arith.constant 0 : i32
    return %arg0, %c0_i32 : i32, i32
  }
}

module attributes {stable_mosaic.version = 11 : i64} {
  func.func @_anomaly_kernel(%arg0: i32, %arg1: i32, %arg2: memref<1x8x8x4xbf16, #tpu.memory_space<vmem>>, %arg3: memref<1x8x8x4xbf16, #tpu.memory_space<vmem>>, %arg4: memref<1x8x8x4xbf16, #tpu.memory_space<vmem>>, %arg5: memref<1x8x8x1xf32, #tpu.memory_space<vmem>>, %arg6: memref<32x32xbf16, #tpu.memory_space<vmem>>, %arg7: memref<1x32xf32, #tpu.memory_space<vmem>>, %arg8: memref<1x8x32xf32, #tpu.memory_space<vmem>>, %arg9: memref<1x8x8x8xbf16, #tpu.memory_space<vmem>>, %arg10: memref<1x8x8x8xbf16, #tpu.memory_space<vmem>>) attributes {dimension_semantics = [#tpu.dimension_semantics<parallel>, #tpu.dimension_semantics<parallel>], iteration_bounds = array<i64: 2, 1>, scalar_prefetch = 0 : i64, scratch_operands = 0 : i64, tpu.core_type = #tpu.core_type<tc>, window_params = [{transform_indices = @transform_0, window_bounds = array<i64: 1, 8, 8, 4>}, {transform_indices = @transform_1, window_bounds = array<i64: 1, 8, 8, 4>}, {transform_indices = @transform_2, window_bounds = array<i64: 1, 8, 8, 4>}, {transform_indices = @transform_3, window_bounds = array<i64: 1, 8, 8, 1>}, {pipeline_mode = #tpu.pipeline_mode<synchronous>, transform_indices = @transform_4, window_bounds = array<i64: 32, 32>}, {pipeline_mode = #tpu.pipeline_mode<synchronous>, transform_indices = @transform_5, window_bounds = array<i64: 1, 32>}, {transform_indices = @transform_6, window_bounds = array<i64: 1, 8, 32>}, {transform_indices = @transform_7, window_bounds = array<i64: 1, 8, 8, 8>}, {transform_indices = @transform_8, window_bounds = array<i64: 1, 8, 8, 8>}]} {
    %c0 = arith.constant 0 : index
    %c0_0 = arith.constant 0 : index
    %c0_1 = arith.constant 0 : index
    %c0_2 = arith.constant 0 : index
    %0 = vector.load %arg2[%c0, %c0_0, %c0_1, %c0_2] : memref<1x8x8x4xbf16, #tpu.memory_space<vmem>>, vector<1x8x8x4xbf16>
    %1 = vector.shape_cast %0 : vector<1x8x8x4xbf16> to vector<8x8x4xbf16>
    %c0_3 = arith.constant 0 : index
    %c0_4 = arith.constant 0 : index
    %c0_5 = arith.constant 0 : index
    %c0_6 = arith.constant 0 : index
    %2 = vector.load %arg3[%c0_3, %c0_4, %c0_5, %c0_6] : memref<1x8x8x4xbf16, #tpu.memory_space<vmem>>, vector<1x8x8x4xbf16>
    %3 = vector.shape_cast %2 : vector<1x8x8x4xbf16> to vector<8x8x4xbf16>
    %c0_7 = arith.constant 0 : index
    %c0_8 = arith.constant 0 : index
    %c0_9 = arith.constant 0 : index
    %c0_10 = arith.constant 0 : index
    %4 = vector.load %arg4[%c0_7, %c0_8, %c0_9, %c0_10] : memref<1x8x8x4xbf16, #tpu.memory_space<vmem>>, vector<1x8x8x4xbf16>
    %5 = vector.shape_cast %4 : vector<1x8x8x4xbf16> to vector<8x8x4xbf16>
    "tpu.trace_start"() <{level = 10 : i32, message = "hqe,hse->hqs"}> : () -> ()
    %cst = arith.constant dense<0.000000e+00> : vector<8x8x8xf32>
    %6 = tpu.matmul %1, %3, %cst {dimension_numbers = #tpu.dot_dimension_numbers<[2], [2], [1], [1], [0, 0, 0, 1, 1, 1], [0], [0]>} : vector<8x8x4xbf16>, vector<8x8x4xbf16>, vector<8x8x8xf32> -> vector<8x8x8xf32>
    "tpu.trace_stop"() : () -> ()
    %cst_11 = arith.constant 5.000000e-01 : f32
    %7 = vector.broadcast %cst_11 : f32 to vector<8x8x8xf32>
    %8 = arith.mulf %6, %7 : vector<8x8x8xf32>
    %cst_12 = arith.constant dense<0xFF800000> : vector<8x8xf32>
    %9 = vector.multi_reduction <maximumf>, %8, %cst_12 [2] : vector<8x8x8xf32> to vector<8x8xf32>
    %10 = vector.shape_cast %9 : vector<8x8xf32> to vector<8x8x1xf32>
    %11 = vector.broadcast %10 : vector<8x8x1xf32> to vector<8x8x8xf32>
    %12 = arith.subf %8, %11 : vector<8x8x8xf32>
    %13 = math.exp %12 : vector<8x8x8xf32>
    %cst_13 = arith.constant dense<0.000000e+00> : vector<8x8xf32>
    %14 = vector.multi_reduction <add>, %13, %cst_13 [2] : vector<8x8x8xf32> to vector<8x8xf32>
    %15 = vector.shape_cast %14 : vector<8x8xf32> to vector<8x8x1xf32>
    %16 = tpu.reciprocal %15 {approx = true} : vector<8x8x1xf32> -> vector<8x8x1xf32>
    %17 = vector.broadcast %16 : vector<8x8x1xf32> to vector<8x8x8xf32>
    %18 = arith.mulf %13, %17 : vector<8x8x8xf32>
    %19 = arith.truncf %18 : vector<8x8x8xf32> to vector<8x8x8xbf16>
    %c0_14 = arith.constant 0 : index
    %c0_15 = arith.constant 0 : index
    %c0_16 = arith.constant 0 : index
    %c0_17 = arith.constant 0 : index
    %20 = vector.load %arg9[%c0_14, %c0_15, %c0_16, %c0_17] : memref<1x8x8x8xbf16, #tpu.memory_space<vmem>>, vector<1x8x8x8xbf16>
    %21 = vector.shape_cast %20 : vector<1x8x8x8xbf16> to vector<8x8x8xbf16>
    %22 = vector.shape_cast %19 : vector<8x8x8xbf16> to vector<1x8x8x8xbf16>
    tpu.vector_store %arg9[%c0_14, %c0_15, %c0_16, %c0_17], %22 {strides = array<i32>} : memref<1x8x8x8xbf16, #tpu.memory_space<vmem>>, vector<1x8x8x8xbf16>,
    %c0_18 = arith.constant 0 : index
    %c0_19 = arith.constant 0 : index
    %c0_20 = arith.constant 0 : index
    %c0_21 = arith.constant 0 : index
    %23 = vector.load %arg5[%c0_18, %c0_19, %c0_20, %c0_21] : memref<1x8x8x1xf32, #tpu.memory_space<vmem>>, vector<1x8x8x1xf32>
    %24 = vector.shape_cast %23 : vector<1x8x8x1xf32> to vector<8x8x1xf32>
    %cst_22 = arith.constant 1.000000e+00 : f32
    %25 = vector.broadcast %cst_22 : f32 to vector<8x8x1xf32>
    %26 = arith.divf %25, %24 : vector<8x8x1xf32>
    %27 = tpu.iota {dimensions = array<i32: 0>} : vector<8x8xi32>
    %c8_i32 = arith.constant 8 : i32
    %28 = arith.muli %arg1, %c8_i32 : i32
    %29 = vector.broadcast %28 : i32 to vector<8x8xi32>
    %30 = arith.addi %27, %29 : vector<8x8xi32>
    %31 = tpu.iota {dimensions = array<i32: 1>} : vector<8x8xi32>
    %32 = arith.subi %30, %31 : vector<8x8xi32>
    %33 = arith.sitofp %32 : vector<8x8xi32> to vector<8x8xf32>
    %cst_23 = arith.constant -5.000000e-01 : f32
    %34 = vector.broadcast %cst_23 : f32 to vector<8x8xf32>
    %35 = arith.mulf %34, %33 : vector<8x8xf32>
    %36 = arith.mulf %35, %33 : vector<8x8xf32>
    %cst_24 = arith.constant 0.398942292 : f32
    %37 = vector.broadcast %cst_24 : f32 to vector<8x8x1xf32>
    %38 = arith.mulf %37, %26 : vector<8x8x1xf32>
    %39 = vector.shape_cast %36 : vector<8x8xf32> to vector<1x8x8xf32>
    %40 = arith.mulf %26, %26 : vector<8x8x1xf32>
    %41 = vector.broadcast %39 : vector<1x8x8xf32> to vector<8x8x8xf32>
    %42 = vector.broadcast %40 : vector<8x8x1xf32> to vector<8x8x8xf32>
    %43 = arith.mulf %41, %42 : vector<8x8x8xf32>
    %44 = math.exp %43 : vector<8x8x8xf32>
    %45 = vector.broadcast %38 : vector<8x8x1xf32> to vector<8x8x8xf32>
    %46 = arith.mulf %45, %44 : vector<8x8x8xf32>
    %47 = arith.truncf %46 : vector<8x8x8xf32> to vector<8x8x8xbf16>
    %c0_25 = arith.constant 0 : index
    %c0_26 = arith.constant 0 : index
    %c0_27 = arith.constant 0 : index
    %c0_28 = arith.constant 0 : index
    %48 = vector.load %arg10[%c0_25, %c0_26, %c0_27, %c0_28] : memref<1x8x8x8xbf16, #tpu.memory_space<vmem>>, vector<1x8x8x8xbf16>
    %49 = vector.shape_cast %48 : vector<1x8x8x8xbf16> to vector<8x8x8xbf16>
    %50 = vector.shape_cast %47 : vector<8x8x8xbf16> to vector<1x8x8x8xbf16>
    tpu.vector_store %arg10[%c0_25, %c0_26, %c0_27, %c0_28], %50 {strides = array<i32>} : memref<1x8x8x8xbf16, #tpu.memory_space<vmem>>, vector<1x8x8x8xbf16>,
    %51 = arith.truncf %18 : vector<8x8x8xf32> to vector<8x8x8xbf16>
    "tpu.trace_start"() <{level = 10 : i32, message = "hqs,hse->hqe"}> : () -> ()
    %cst_29 = arith.constant dense<0.000000e+00> : vector<8x8x4xf32>
    %52 = tpu.matmul %51, %5, %cst_29 {dimension_numbers = #tpu.dot_dimension_numbers<[2], [1], [1], [2], [0, 0, 0, 1, 1, 2], [0], [0]>} : vector<8x8x8xbf16>, vector<8x8x4xbf16>, vector<8x8x4xf32> -> vector<8x8x4xf32>
    "tpu.trace_stop"() : () -> ()
    %53 = vector.extract_strided_slice %52 {offsets = [0, 0, 0], sizes = [1, 8, 4], strides = [1, 1, 1]} : vector<8x8x4xf32> to vector<1x8x4xf32>
    %54 = vector.shape_cast %53 : vector<1x8x4xf32> to vector<8x4xf32>
    %55 = vector.extract_strided_slice %52 {offsets = [1, 0, 0], sizes = [1, 8, 4], strides = [1, 1, 1]} : vector<8x8x4xf32> to vector<1x8x4xf32>
    %56 = vector.shape_cast %55 : vector<1x8x4xf32> to vector<8x4xf32>
    %57 = vector.extract_strided_slice %52 {offsets = [2, 0, 0], sizes = [1, 8, 4], strides = [1, 1, 1]} : vector<8x8x4xf32> to vector<1x8x4xf32>
    %58 = vector.shape_cast %57 : vector<1x8x4xf32> to vector<8x4xf32>
    %59 = vector.extract_strided_slice %52 {offsets = [3, 0, 0], sizes = [1, 8, 4], strides = [1, 1, 1]} : vector<8x8x4xf32> to vector<1x8x4xf32>
    %60 = vector.shape_cast %59 : vector<1x8x4xf32> to vector<8x4xf32>
    %61 = vector.extract_strided_slice %52 {offsets = [4, 0, 0], sizes = [1, 8, 4], strides = [1, 1, 1]} : vector<8x8x4xf32> to vector<1x8x4xf32>
    %62 = vector.shape_cast %61 : vector<1x8x4xf32> to vector<8x4xf32>
    %63 = vector.extract_strided_slice %52 {offsets = [5, 0, 0], sizes = [1, 8, 4], strides = [1, 1, 1]} : vector<8x8x4xf32> to vector<1x8x4xf32>
    %64 = vector.shape_cast %63 : vector<1x8x4xf32> to vector<8x4xf32>
    %65 = vector.extract_strided_slice %52 {offsets = [6, 0, 0], sizes = [1, 8, 4], strides = [1, 1, 1]} : vector<8x8x4xf32> to vector<1x8x4xf32>
    %66 = vector.shape_cast %65 : vector<1x8x4xf32> to vector<8x4xf32>
    %67 = vector.extract_strided_slice %52 {offsets = [7, 0, 0], sizes = [1, 8, 4], strides = [1, 1, 1]} : vector<8x8x4xf32> to vector<1x8x4xf32>
    %68 = vector.shape_cast %67 : vector<1x8x4xf32> to vector<8x4xf32>
    %69 = tpu.concatenate %54, %56, %58, %60, %62, %64, %66, %68 in 1 : vector<8x4xf32>, vector<8x4xf32>, vector<8x4xf32>, vector<8x4xf32>, vector<8x4xf32>, vector<8x4xf32>, vector<8x4xf32>, vector<8x4xf32> -> vector<8x32xf32>
    %70 = arith.truncf %69 : vector<8x32xf32> to vector<8x32xbf16>
    %c0_30 = arith.constant 0 : index
    %c0_31 = arith.constant 0 : index
    %71 = vector.load %arg6[%c0_30, %c0_31] : memref<32x32xbf16, #tpu.memory_space<vmem>>, vector<32x32xbf16>
    %cst_32 = arith.constant dense<0.000000e+00> : vector<8x32xf32>
    %72 = tpu.matmul %70, %71, %cst_32 {dimension_numbers = #tpu.dot_dimension_numbers<[1], [0], [0], [1], [0, 0, 1, 1], [], []>} : vector<8x32xbf16>, vector<32x32xbf16>, vector<8x32xf32> -> vector<8x32xf32>
    %c0_33 = arith.constant 0 : index
    %c0_34 = arith.constant 0 : index
    %73 = vector.load %arg7[%c0_33, %c0_34] : memref<1x32xf32, #tpu.memory_space<vmem>>, vector<1x32xf32>
    %74 = vector.broadcast %73 : vector<1x32xf32> to vector<8x32xf32>
    %75 = arith.addf %72, %74 : vector<8x32xf32>
    %c0_35 = arith.constant 0 : index
    %c0_36 = arith.constant 0 : index
    %c0_37 = arith.constant 0 : index
    %76 = vector.load %arg8[%c0_35, %c0_36, %c0_37] : memref<1x8x32xf32, #tpu.memory_space<vmem>>, vector<1x8x32xf32>
    %77 = vector.shape_cast %76 : vector<1x8x32xf32> to vector<8x32xf32>
    %78 = vector.shape_cast %75 : vector<8x32xf32> to vector<1x8x32xf32>
    tpu.vector_store %arg8[%c0_35, %c0_36, %c0_37], %78 {strides = array<i32>} : memref<1x8x32xf32, #tpu.memory_space<vmem>>, vector<1x8x32xf32>,
    return
  }
  func.func @transform_0(%arg0: i32, %arg1: i32) -> (i32, i32, i32, i32) {
    %c0_i32 = arith.constant 0 : i32
    %c0_i32_0 = arith.constant 0 : i32
    %c0_i32_1 = arith.constant 0 : i32
    return %arg0, %c0_i32, %arg1, %c0_i32_0 : i32, i32, i32, i32
  }
  func.func @transform_1(%arg0: i32, %arg1: i32) -> (i32, i32, i32, i32) {
    %c0_i32 = arith.constant 0 : i32
    %c0_i32_0 = arith.constant 0 : i32
    %c0_i32_1 = arith.constant 0 : i32
    %c0_i32_2 = arith.constant 0 : i32
    return %arg0, %c0_i32, %c0_i32_0, %c0_i32_1 : i32, i32, i32, i32
  }
  func.func @transform_2(%arg0: i32, %arg1: i32) -> (i32, i32, i32, i32) {
    %c0_i32 = arith.constant 0 : i32
    %c0_i32_0 = arith.constant 0 : i32
    %c0_i32_1 = arith.constant 0 : i32
    %c0_i32_2 = arith.constant 0 : i32
    return %arg0, %c0_i32, %c0_i32_0, %c0_i32_1 : i32, i32, i32, i32
  }
  func.func @transform_3(%arg0: i32, %arg1: i32) -> (i32, i32, i32, i32) {
    %c0_i32 = arith.constant 0 : i32
    %c0_i32_0 = arith.constant 0 : i32
    %c0_i32_1 = arith.constant 0 : i32
    return %arg0, %c0_i32, %arg1, %c0_i32_0 : i32, i32, i32, i32
  }
  func.func @transform_4(%arg0: i32, %arg1: i32) -> (i32, i32) {
    %c0_i32 = arith.constant 0 : i32
    %c0_i32_0 = arith.constant 0 : i32
    %c0_i32_1 = arith.constant 0 : i32
    return %c0_i32, %c0_i32_0 : i32, i32
  }
  func.func @transform_5(%arg0: i32, %arg1: i32) -> (i32, i32) {
    %c0_i32 = arith.constant 0 : i32
    %c0_i32_0 = arith.constant 0 : i32
    %c0_i32_1 = arith.constant 0 : i32
    return %c0_i32, %c0_i32_0 : i32, i32
  }
  func.func @transform_6(%arg0: i32, %arg1: i32) -> (i32, i32, i32) {
    %c0_i32 = arith.constant 0 : i32
    %c0_i32_0 = arith.constant 0 : i32
    return %arg0, %arg1, %c0_i32 : i32, i32, i32
  }
  func.func @transform_7(%arg0: i32, %arg1: i32) -> (i32, i32, i32, i32) {
    %c0_i32 = arith.constant 0 : i32
    %c0_i32_0 = arith.constant 0 : i32
    %c0_i32_1 = arith.constant 0 : i32
    return %arg0, %c0_i32, %arg1, %c0_i32_0 : i32, i32, i32, i32
  }
  func.func @transform_8(%arg0: i32, %arg1: i32) -> (i32, i32, i32, i32) {
    %c0_i32 = arith.constant 0 : i32
    %c0_i32_0 = arith.constant 0 : i32
    %c0_i32_1 = arith.constant 0 : i32
    return %arg0, %c0_i32, %arg1, %c0_i32_0 : i32, i32, i32, i32
  }
}

</mosaic_0001>

<bundles_post_ra>
// kernel: cross_attention_forward.6
= control target key start
LH: loop header
LB: loop body
LE: loop exit
PB: predicated region body
PF: predicated region fallthrough
CT: control target
= control target key end

     0   :  { %7 = vsyncpa [#allocation3], 0  ;;  %s194_s0 = inlined_call_operand.hbm [shape: f32[16,32], index: 0, kind: input, shape index: {}]   ;;  %s195_s1 = inlined_call_operand.hbm [shape: bf16[32,96], index: 1, kind: input, shape index: {}]   ;;  %s196_s2 = inlined_call_operand.vmem [shape: bf16[16,96], index: 2, kind: output, shape index: {}]  }
   0x1   :  { %s13_s11 = sshll.u32 %s194_s0, 4  ;;  %s14_s11 = int_to_ptr.hbm [resolvable:$true] %s13_s11 }
   0x2   :  { %8 = vsyncpa [#allocation5], 0  ;;  %s161_s12 = smov [#allocation2]   ;;  %s26_s16 = sshll.u32 %s195_s1, 4  ;;  %s27_s16 = int_to_ptr.hbm [resolvable:$true] %s26_s16 }
   0x3   :  { %s15_s13 = sshll.u32 %s161_s12, 4  ;;  %s162_s17 = smov 128   ;;  %s16_s13 = int_to_ptr.vmem [resolvable:$true] %s15_s13 }
   0x4   :  { %s163_s18 = smov 8   ;;  %s164_s19 = smov [#allocation4]  }
   0x5   :  { %21 = dma.hbm_to_vmem [thread:$0]  %s14_s11, 256, %s16_s13, [#allocation3], %s162_s17, %s162_s17, %s163_s18  }
   0x6   :  { %s28_s20 = sshll.u32 %s164_s19, 4  ;;  %s165_s21 = smov 64   ;;  %s29_s20 = int_to_ptr.vmem [resolvable:$true] %s28_s20 }
   0x7   :  { %s166_s22 = smov 4  }
   0x8   :  { %34 = dma.hbm_to_vmem [thread:$0]  %s27_s16, 256, %s29_s20, [#allocation5], %s165_s21, %s165_s21, %s166_s22  }
   0x9   :  { %157 = dma.done.wait [#allocation3], 256  }
   0xa   :  { %158 = vsyncadd [#allocation3], 4294967040 }
   0xb   :  { %159 = dma.done.wait [#allocation5], 256  }
   0xc   :  { %160 = vsyncadd [#allocation5], 4294967040  ;;  %v102_v0 = vld [vmem:[#allocation4 + $0x8] sm:$0xff]  ;;  %v101_v1 = vld [vmem:[#allocation4] sm:$0xff]  ;;  %vm63_vm0 = vcmask 261120   ;;  %vm83_vm1 = vcmask 781312  }
   0xd   :  { %73 = vmatpush.bf16.msra.mxu0 %v102_v0  ;;  %v44_v2 = vld [vmem:[#allocation2] sm:$0xff]  ;;  %v45_v3 = vld [vmem:[#allocation2 + $0x8] sm:$0xff] }
   0xe   :  { %v46_v4 = vpack.c.bf16 %v45_v3, %v44_v2 }
  0x11   :  { %74 = vmatpush.bf16.msra.mxu0 %v101_v1 }
  0x14   :  { %100 = vmatmul.msk.bf16.vlgmr.msra.gmra.mxu0 %vm63_vm0, %v46_v4 }
  0x91   :  { %v76_v5 = vpop.f32.mrf.mxu0 }
  0x92   :  { %v81_v6 = vpack.c.bf16 %v76_v5, %v76_v5 }
  0x94   :  { %84 = vst.msk [vmem:[%s196_s2] sm:$0xf] %vm83_vm1, %v81_v6 }
  0x99   :  { %v78_v7 = vpop.f32.mrf.mxu0 }
  0x9a   :  { %v82_v8 = vpack.c.bf16 %v78_v7, %v78_v7 }
  0x9c   :  { %85 = vst.msk [vmem:[%s196_s2 + $0x4] sm:$0xf] %vm83_vm1, %v82_v8 }
  0x9d   :  { %90 = vsyncpa [#allocation3], 1 }
  0x9e   :  { %91 = vsyncpa [#allocation5], 1 }

// kernel: cross_attention_forward.5
= control target key start
LH: loop header
LB: loop body
LE: loop exit
PB: predicated region body
PF: predicated region fallthrough
CT: control target
= control target key end

     0   :  { %11 = vsyncpa [#allocation3], 0  ;;  %s176_s21 = smov [#allocation2]   ;;  %s177_s23 = smov 64   ;;  %s239_s0 = inlined_call_operand.vmem [shape: f32[16,32], index: 0, kind: input, shape index: {}]   ;;  %s240_s1 = inlined_call_operand.hbm [shape: bf16[32,64], index: 1, kind: input, shape index: {}]   ;;  %s241_s2 = inlined_call_operand.vmem [shape: bf16[32,8], index: 2, kind: input, shape index: {}]   ;;  %s242_s3 = inlined_call_operand.vmem [shape: f32[1,8], index: 3, kind: input, shape index: {}]   ;;  %s243_s4 = inlined_call_operand.vmem [shape: bf16[16,64], index: 4, kind: output, shape index: {0}]   ;;  %s244_s5 = inlined_call_operand.vmem [shape: f32[16,8], index: 5, kind: output, shape index: {1}]  }
   0x1   :  { %s18_s20 = sshll.u32 %s240_s1, 4  ;;  %s20_s22 = sshll.u32 %s176_s21, 4  ;;  %s19_s20 = int_to_ptr.hbm [resolvable:$true] %s18_s20  ;;  %s21_s22 = int_to_ptr.vmem [resolvable:$true] %s20_s22 }
   0x2   :  { %s178_s24 = smov 4  }
   0x3   :  { %26 = dma.hbm_to_vmem [thread:$0]  %s19_s20, 256, %s21_s22, [#allocation3], %s177_s23, %s177_s23, %s178_s24  }
   0x4   :  { %174 = dma.done.wait [#allocation3], 256  }
   0x5   :  { %175 = vsyncadd [#allocation3], 4294967040  ;;  %v143_v0 = vld [vmem:[#allocation2 + $0x8] sm:$0xff]  ;;  %v142_v2 = vld [vmem:[#allocation2] sm:$0xff]  ;;  %vm55_vm0 = vcmask 261120   ;;  %vm75_vm1 = vcmask 519168  }
   0x6   :  { %v145_v1 = vld [vmem:[%s241_s2 + $0x8] sm:$0xff]  ;;  %v144_v3 = vld [vmem:[%s241_s2] sm:$0xff]  ;;  %65 = vmatpush.bf16.msra.mxu0 %v143_v0  ;;  %vm112_vm2 = vcmask 64512  }
   0x7   :  { %104 = vmatpush.bf16.msra.mxu1 %v145_v1  ;;  %v36_v4 = vld [vmem:[%s239_s0] sm:$0xff]  ;;  %v37_v5 = vld [vmem:[%s239_s0 + $0x8] sm:$0xff] }
   0x8   :  { %v38_v6 = vpack.c.bf16 %v37_v5, %v36_v4  ;;  %v149_v7 = vld [vmem:[%s242_s3] ss:$0 sm:$0xff] }
   0xa   :  { %66 = vmatpush.bf16.msra.mxu0 %v142_v2 }
   0xb   :  { %105 = vmatpush.bf16.msra.mxu1 %v144_v3 }
   0xd   :  { %132 = vmatmul.msk.bf16.vlgmr.msra.gmra.mxu0 %vm55_vm0, %v38_v6 }
   0xe   :  { %141 = vmatmul.msk.bf16.vlgmr.msra.gmra.mxu1 %vm55_vm0, %v38_v6 }
  0x8a   :  { %v68_v8 = vpop.f32.mrf.mxu0 }
  0x8b   :  { %v107_v9 = vpop.f32.mrf.mxu1  ;;  %v73_v10 = vpack.c.bf16 %v68_v8, %v68_v8 }
  0x8c   :  { %v108_v11 = vadd.f32 %v149_v7, %v107_v9 }
  0x8d   :  { %76 = vst.msk [vmem:[%s243_s4] sm:$0xf] %vm75_vm1, %v73_v10 }
  0x8e   :  { %113 = vst.msk [vmem:[%s244_s5] sm:$0xff] %vm112_vm2, %v108_v11 }
  0x92   :  { %v70_v12 = vpop.f32.mrf.mxu0 }
  0x93   :  { %v109_v13 = vpop.f32.mrf.mxu1  ;;  %v74_v14 = vpack.c.bf16 %v70_v12, %v70_v12 }
  0x94   :  { %v110_v15 = vadd.f32 %v149_v7, %v109_v13 }
  0x95   :  { %77 = vst.msk [vmem:[%s243_s4 + $0x4] sm:$0xf] %vm75_vm1, %v74_v14 }
  0x96   :  { %114 = vst.msk [vmem:[%s244_s5 + $0x8] sm:$0xff] %vm112_vm2, %v110_v15 }
  0x97   :  { %123 = vsyncpa [#allocation3], 1 }

// kernel: cross_attention_forward.8
= control target key start
LH: loop header
LB: loop body
LE: loop exit
PB: predicated region body
PF: predicated region fallthrough
CT: control target
= control target key end

     0   :  { %s1137_s12 = smov 0   ;;  %s1139_s13 = smov 0   ;;  %s1397_s0 = inlined_call_operand.vmem [shape: bf16[2,8,8,4], index: 0, kind: input, shape index: {}]   ;;  %s1398_s1 = inlined_call_operand.vmem [shape: bf16[2,8,8,4], index: 1, kind: input, shape index: {}]   ;;  %s1399_s2 = inlined_call_operand.vmem [shape: bf16[2,8,8,4], index: 2, kind: input, shape index: {}]   ;;  %s1400_s3 = inlined_call_operand.vmem [shape: bf16[2,8,32], index: 3, kind: output, shape index: {}]  }
   0x1   :  { %s1141_s14 = smov 0  }
   0x2 LB: > { %s25_s15 = sadd.s32 1, %s1104_s13  ;;  %p994_p0 = scmp.ge.s32.totalorder %s1108_s14, 1  ;;  %s1108_s14 = sphi %s1141_s14, %s13_s14   ;;  %s1104_s13 = sphi %s1139_s13, %s1402_s13   ;;  %s1100_s12 = sphi %s1137_s12, %s1401_s12  }
   0x3   : > { %p27_p1 = scmp.ge.s32.totalorder %s25_s15, 2  ;;  %p192_p2 = scmp.lt.s32.totalorder %s1108_s14, 3 }
   0x5   : > { %s1404_s15 = smov (%p27_p1, %s25_s15), 0  ;;  %p193_p3 = pnand %p994_p0, %p192_p2 }
   0x6   : > { %p241_p4 = scmp.lt.s32.totalorder (!%p193_p3), %s1100_s12, 1  ;;  %s1110_s26 = smov (!%p193_p3), 12  }
   0x7   : > { %196 = sbr.rel (%p193_p3) target bundleno = 707 (0x2c3), region = 32  ;;  %s1111_s27 = smov (!%p193_p3), 8  }
   0x8   : > { %s1112_s28 = smov (!%p193_p3), 4   ;;  %s1113_s29 = smov (!%p193_p3), 24  }
   0x9   : > { %s1114_s30 = smov (!%p193_p3), 16   ;;  %s1115_s4 = smov (!%p193_p3), 20  }
   0xa   : > { %s1116_s5 = smov (!%p193_p3), 28  }
   0xc   : > { %s1406_s12 = smov (!%p241_p4, %s1100_s12), 1  ;;  %vm302_vm0 = vcmask 31744   ;;  %vm463_vm1 = vcmask 64512   ;;  %vm563_vm2 = vcmask 1043456   ;;  %vm722_vm3 = vcmask 1041409  }
   0xd   : > { %s1158_s16 = sshll.u32 %s1406_s12, 5  ;;  %vm725_vm4 = vcmask 1042434   ;;  %vm728_vm5 = vcmask 1043459   ;;  %vm731_vm6 = vcmask 1044484   ;;  %vm734_vm7 = vcmask 1045509   ;;  %s1001_s6 = sshll.u32 %s1406_s12, 2 }
   0xe   : > { %s258_s19 = scalar_lea.vmem %s1398_s1, %s1158_s16  ;;  %s248_s22 = scalar_lea.vmem %s1397_s0, %s1158_s16  ;;  %vm737_vm8 = vcmask 1046534   ;;  %vm740_vm9 = vcmask 1047559   ;;  %vm864_vm10 = vcmask 97280   ;;  %vm866_vm11 = vcmask 130048  }
   0xf   : > { %v286_v0 = vld [vmem:[%s258_s19] sm:$0xf]  ;;  %v287_v1 = vld [vmem:[%s258_s19 + $0x4] sm:$0xf]  ;;  %v288_v2 = vld [vmem:[%s258_s19 + $0x8] sm:$0xf]  ;;  %s268_s25 = scalar_lea.vmem %s1399_s2, %s1158_s16  ;;  %s276_s9 = scalar_lea.vmem %s1400_s3, %s1001_s6 }
  0x10   : > { %v307_v3 = vsel %vm302_vm0, %v286_v0, 0  ;;  %v326_v4 = vsel %vm302_vm0, %v287_v1, 0  ;;  %v345_v5 = vsel %vm302_vm0, %v288_v2, 0  ;;  %v289_v6 = vld [vmem:[%s258_s19 + $0xc] sm:$0xf]  ;;  %vm868_vm12 = vcmask 162816  }
  0x11   : > { %316 = vmatpush.bf16.xpose.msra.mxu0 %v307_v3  ;;  %335 = vmatpush.bf16.xpose.msra.mxu1 %v326_v4  ;;  %v364_v7 = vsel %vm302_vm0, %v289_v6, 0  ;;  %v292_v8 = vld [vmem:[%s258_s19 + $0x18] sm:$0xf]  ;;  %v293_v10 = vld [vmem:[%s258_s19 + $0x1c] sm:$0xf]  ;;  %vm870_vm13 = vcmask 195584  }
  0x12   : > { %354 = vmatpush.bf16.xpose.msra.mxu2 %v345_v5  ;;  %373 = vmatpush.bf16.xpose.msra.mxu3 %v364_v7  ;;  %v421_v9 = vsel %vm302_vm0, %v292_v8, 0  ;;  %v291_v11 = vld [vmem:[%s258_s19 + $0x14] sm:$0xf]  ;;  %v440_v12 = vsel %vm302_vm0, %v293_v10, 0  ;;  %v290_v14 = vld [vmem:[%s258_s19 + $0x10] sm:$0xf] }
  0x13   : > { %v402_v13 = vsel %vm302_vm0, %v291_v11, 0  ;;  %v278_v15 = vld [vmem:[%s248_s22] sm:$0xf]  ;;  %v279_v16 = vld [vmem:[%s248_s22 + $0x4] sm:$0xf]  ;;  %v383_v17 = vsel %vm302_vm0, %v290_v14, 0 }
  0x14   : > { %v280_v18 = vld [vmem:[%s248_s22 + $0x8] sm:$0xf]  ;;  %v281_v19 = vld [vmem:[%s248_s22 + $0xc] sm:$0xf]  ;;  %v283_v20 = vld [vmem:[%s248_s22 + $0x14] sm:$0xf] }
  0x15   : > { %v282_v21 = vld [vmem:[%s248_s22 + $0x10] sm:$0xf]  ;;  %v284_v22 = vld [vmem:[%s248_s22 + $0x18] sm:$0xf]  ;;  %v285_v23 = vld [vmem:[%s248_s22 + $0x1c] sm:$0xf] }
  0x16   : > { %vm872_vm14 = vcmask 228352   ;;  %vm875_vm15 = vcmask 257024  }
  0x18   : > { %1002 = vmatmul.msk.bf16.vlgmr.msra.gmra.mxu0 %vm302_vm0, %v278_v15  ;;  %1003 = vmatmul.msk.bf16.vlgmr.msra.gmra.mxu1 %vm302_vm0, %v279_v16 }
  0x19   : > { %411 = vmatpush.bf16.xpose.msrb.mxu1 %v402_v13  ;;  %392 = vmatpush.bf16.xpose.msrb.mxu0 %v383_v17 }
  0x1a   : > { %430 = vmatpush.bf16.xpose.msrb.mxu2 %v421_v9  ;;  %449 = vmatpush.bf16.xpose.msrb.mxu3 %v440_v12 }
  0x1b   : > { %1004 = vmatmul.msk.bf16.vlgmr.msra.gmra.mxu2 %vm302_vm0, %v280_v18  ;;  %1005 = vmatmul.msk.bf16.vlgmr.msra.gmra.mxu3 %vm302_vm0, %v281_v19 }
  0x28   : > { %1007 = vmatmul.msk.bf16.vlgmr.msrb.gmra.mxu1 %vm302_vm0, %v283_v20  ;;  %1006 = vmatmul.msk.bf16.vlgmr.msrb.gmra.mxu0 %vm302_vm0, %v282_v21 }
  0x2b   : > { %1008 = vmatmul.msk.bf16.vlgmr.msrb.gmra.mxu2 %vm302_vm0, %v284_v22  ;;  %1009 = vmatmul.msk.bf16.vlgmr.msrb.gmra.mxu3 %vm302_vm0, %v285_v23 }
  0x95   : > { %v318_v24 = vpop.f32.mrf.mxu0  ;;  %v337_v25 = vpop.f32.mrf.mxu1 }
  0x96   : > { %v455_v26 = vmul.f32 0.5, %v318_v24  ;;  %v456_v28 = vmul.f32 0.5, %v337_v25 }
  0x98   : > { %v464_v27 = vsel %vm463_vm1, %v455_v26, -inf  ;;  %v467_v34 = vsel %vm463_vm1, %v456_v28, -inf }
  0x99   : > { %465 = vmax.xlane.f32.xlu1 %v464_v27 }
  0x9d   : > { %v339_v32 = vpop.f32.mrf.mxu1  ;;  %v320_v33 = vpop.f32.mrf.mxu0 }
  0x9e   : > { %v356_v29 = vpop.f32.mrf.mxu2  ;;  %v375_v30 = vpop.f32.mrf.mxu3  ;;  %v294_v32 = vld [vmem:[%s268_s25] sm:$0xf] }
  0x9f   : > { %v457_v31 = vmul.f32 0.5, %v356_v29  ;;  %v458_v36 = vmul.f32 0.5, %v375_v30  ;;  %v565_v33 = vsel %vm563_vm2, %v294_v32, 0 }
  0xa0   : > { %574 = vmatpush.bf16.msra.mxu0 %v565_v33 }
  0xa1   : > { %v470_v35 = vsel %vm463_vm1, %v457_v31, -inf  ;;  %468 = vmax.xlane.f32.xlu1 %v467_v34  ;;  %v473_v40 = vsel %vm463_vm1, %v458_v36, -inf  ;;  %v296_v34 = vld [vmem:[%s268_s25 + $0x8] sm:$0xf] }
  0xa2   : > { %471 = vmax.xlane.f32.xlu0 %v470_v35  ;;  %v603_v35 = vsel %vm563_vm2, %v296_v34, 0 }
  0xa3   : > { %612 = vmatpush.bf16.msra.mxu2 %v603_v35 }
  0xa5   : > { %v413_v39 = vpop.f32.mrf.mxu1  ;;  %v394_v41 = vpop.f32.mrf.mxu0 }
  0xa6   : > { %v358_v37 = vpop.f32.mrf.mxu2  ;;  %v377_v38 = vpop.f32.mrf.mxu3  ;;  %v460_v42 = vmul.f32 0.5, %v413_v39  ;;  %v459_v44 = vmul.f32 0.5, %v394_v41  ;;  %v298_v41 = vld [vmem:[%s268_s25 + $0x10] sm:$0xf] }
  0xa7   : > { %v295_v37 = vld [vmem:[%s268_s25 + $0x4] sm:$0xf] }
  0xa8   : > { %v479_v43 = vsel %vm463_vm1, %v460_v42, -inf  ;;  %v476_v48 = vsel %vm463_vm1, %v459_v44, -inf  ;;  %v584_v39 = vsel %vm563_vm2, %v295_v37, 0 }
  0xa9   : > { %480 = vmax.xlane.f32.xlu1 %v479_v43  ;;  %593 = vmatpush.bf16.msra.mxu1 %v584_v39 }
  0xaa   : > { %474 = vmax.xlane.f32.xlu0 %v473_v40  ;;  %v300_v40 = vld [vmem:[%s268_s25 + $0x18] sm:$0xf] }
  0xab   : > { %v679_v43 = vsel %vm563_vm2, %v300_v40, 0 }
  0xac   : > { %688 = vmatpush.bf16.msrb.mxu2 %v679_v43 }
  0xad   : > { %v396_v49 = vpop.f32.mrf.mxu0  ;;  %v415_v50 = vpop.f32.mrf.mxu1 }
  0xae   : > { %v432_v45 = vpop.f32.mrf.mxu2  ;;  %v451_v46 = vpop.f32.mrf.mxu3 }
  0xaf   : > { %v461_v47 = vmul.f32 0.5, %v432_v45  ;;  %v462_v52 = vmul.f32 0.5, %v451_v46  ;;  %v301_v45 = vld [vmem:[%s268_s25 + $0x1c] sm:$0xf]  ;;  %v299_v46 = vld [vmem:[%s268_s25 + $0x14] sm:$0xf] }
  0xb1   : > { %v482_v51 = vsel %vm463_vm1, %v461_v47, -inf  ;;  %v485_v55 = vsel %vm463_vm1, %v462_v52, -inf }
  0xb2   : > { %483 = vmax.xlane.f32.xlu2 %v482_v51  ;;  %477 = vmax.xlane.f32.xlu0 %v476_v48  ;;  %v660_v48 = vsel %vm563_vm2, %v299_v46, 0 }
  0xb3   : > { %669 = vmatpush.bf16.msrb.mxu1 %v660_v48 }
  0xb6   : > { %v434_v53 = vpop.f32.mrf.mxu2  ;;  %v453_v54 = vpop.f32.mrf.mxu3 }
  0xba   : > { %486 = vmax.xlane.f32.xlu2 %v485_v55 }
 0x10c   : > { %v466_v56 = vpop.xlane.xlu1 %465 }
 0x10d   : > { %v488_v57 = vsub.f32 %v455_v26, %v466_v56 }
 0x10f   : > { %v496_v58 = vmul.f32 1.442695, %v488_v57 }
 0x111   : > { %1054 = vpow2.f32 %v496_v58 }
 0x114   : > { %v469_v61 = vpop.xlane.xlu1 %468 }
 0x115   : > { %v472_v59 = vpop.xlane.xlu0 %471  ;;  %v489_v63 = vsub.f32 %v456_v28, %v469_v61 }
 0x116   : > { %v490_v60 = vsub.f32 %v457_v31, %v472_v59 }
 0x117   : > { %v1192_v0 = vpop.eup %1054  ;;  %v498_v2 = vmul.f32 1.442695, %v489_v63 }
 0x118   : > { %v500_v62 = vmul.f32 1.442695, %v490_v60  ;;  %v512_v1 = vsel %vm463_vm1, %v1192_v0, 0.0 }
 0x119   : > { %513 = vadd.xlane.f32.xlu1 %v512_v1 }
 0x11a   : > { %1056 = vpow2.f32 %v500_v62 }
 0x11b   : > { %1058 = vpow2.f32 %v498_v2 }
 0x11c   : > { %v481_v8 = vpop.xlane.xlu1 %480 }
 0x11d   : > { %v475_v3 = vpop.xlane.xlu0 %474  ;;  %v493_v15 = vsub.f32 %v460_v42, %v481_v8 }
 0x11e   : > { %v491_v4 = vsub.f32 %v458_v36, %v475_v3  ;;  %v297_v36 = vld [vmem:[%s268_s25 + $0xc] sm:$0xf] }
 0x11f   : > { %v506_v20 = vmul.f32 1.442695, %v493_v15  ;;  %v622_v38 = vsel %vm563_vm2, %v297_v36, 0 }
 0x120   : > { %v1196_v5 = vpop.eup %1056  ;;  %v502_v6 = vmul.f32 1.442695, %v491_v4  ;;  %631 = vmatpush.bf16.msra.mxu3 %v622_v38 }
 0x121   : > { %v518_v7 = vsel %vm463_vm1, %v1196_v5, 0.0  ;;  %v1200_v11 = vpop.eup %1058 }
 0x122   : > { %1060 = vpow2.f32 %v502_v6  ;;  %519 = vadd.xlane.f32.xlu2 %v518_v7  ;;  %v515_v18 = vsel %vm463_vm1, %v1200_v11, 0.0 }
 0x125   : > { %v484_v9 = vpop.xlane.xlu2 %483  ;;  %v478_v10 = vpop.xlane.xlu0 %477 }
 0x126   : > { %v494_v12 = vsub.f32 %v461_v47, %v484_v9  ;;  %v492_v13 = vsub.f32 %v459_v44, %v478_v10  ;;  %v641_v44 = vsel %vm563_vm2, %v298_v41, 0  ;;  %v698_v47 = vsel %vm563_vm2, %v301_v45, 0 }
 0x127   : > { %650 = vmatpush.bf16.msrb.mxu0 %v641_v44  ;;  %707 = vmatpush.bf16.msrb.mxu3 %v698_v47 }
 0x128   : > { %v1202_v14 = vpop.eup %1060  ;;  %v508_v16 = vmul.f32 1.442695, %v494_v12  ;;  %v504_v17 = vmul.f32 1.442695, %v492_v13 }
 0x129   : > { %v521_v19 = vsel %vm463_vm1, %v1202_v14, 0.0 }
 0x12a   : > { %1062 = vpow2.f32 %v508_v16  ;;  %516 = vadd.xlane.f32.xlu2 %v515_v18  ;;  %522 = vadd.xlane.f32.xlu0 %v521_v19 }
 0x12b   : > { %1064 = vpow2.f32 %v504_v17 }
 0x12c   : > { %1066 = vpow2.f32 %v506_v20 }
 0x12d   : > { %v487_v21 = vpop.xlane.xlu2 %486 }
 0x12e   : > { %v495_v22 = vsub.f32 %v462_v52, %v487_v21 }
 0x130   : > { %v1208_v23 = vpop.eup %1062  ;;  %v510_v24 = vmul.f32 1.442695, %v495_v22 }
 0x131   : > { %v1210_v25 = vpop.eup %1064  ;;  %v530_v26 = vsel %vm463_vm1, %v1208_v23, 0.0 }
 0x132   : > { %1068 = vpow2.f32 %v510_v24  ;;  %531 = vadd.xlane.f32.xlu0 %v530_v26  ;;  %v524_v27 = vsel %vm463_vm1, %v1210_v25, 0.0  ;;  %v1216_v28 = vpop.eup %1066 }
 0x133   : > { %525 = vadd.xlane.f32.xlu2 %v524_v27  ;;  %v527_v31 = vsel %vm463_vm1, %v1216_v28, 0.0 }
 0x138   : > { %v1218_v29 = vpop.eup %1068 }
 0x139   : > { %v533_v30 = vsel %vm463_vm1, %v1218_v29, 0.0 }
 0x13a   : > { %534 = vadd.xlane.f32.xlu1 %v533_v30  ;;  %528 = vadd.xlane.f32.xlu0 %v527_v31 }
 0x18c   : > { %v514_v42 = vpop.xlane.xlu1 %513 }
 0x18d   : > { %1070 = vrcp.f32 %v514_v42 }
 0x193   : > { %v1071_v49 = vpop.eup %1070 }
 0x194   : > { %v544_v51 = vmul.f32 %v1071_v49, %v1192_v0 }
 0x195   : > { %v520_v50 = vpop.xlane.xlu2 %519 }
 0x196   : > { %1072 = vrcp.f32 %v520_v50  ;;  %v552_v52 = vpack.c.bf16 %v544_v51, %v544_v51 }
 0x198   : > { %1010 = vmatmul.msk.bf16.vlgmr.msra.gmra.mxu0 %vm463_vm1, %v552_v52 }
 0x19c   : > { %v1073_v53 = vpop.eup %1072 }
 0x19d   : > { %v546_v54 = vmul.f32 %v1073_v53, %v1196_v5  ;;  %v517_v55 = vpop.xlane.xlu2 %516  ;;  %v523_v56 = vpop.xlane.xlu0 %522 }
 0x19e   : > { %1074 = vrcp.f32 %v517_v55 }
 0x19f   : > { %v554_v57 = vpack.c.bf16 %v546_v54, %v546_v54  ;;  %1076 = vrcp.f32 %v523_v56 }
 0x1a1   : > { %1012 = vmatmul.msk.bf16.vlgmr.msra.gmra.mxu2 %vm463_vm1, %v554_v57 }
 0x1a4   : > { %v1075_v58 = vpop.eup %1074 }
 0x1a5   : > { %v1077_v59 = vpop.eup %1076  ;;  %v545_v60 = vmul.f32 %v1075_v58, %v1200_v11  ;;  %v532_v61 = vpop.xlane.xlu0 %531 }
 0x1a6   : > { %v547_v62 = vmul.f32 %v1077_v59, %v1202_v14  ;;  %v526_v63 = vpop.xlane.xlu2 %525  ;;  %1078 = vrcp.f32 %v532_v61 }
 0x1a7   : > { %v553_v0 = vpack.c.bf16 %v545_v60, %v545_v60  ;;  %1080 = vrcp.f32 %v526_v63 }
 0x1a8   : > { %v555_v1 = vpack.c.bf16 %v547_v62, %v547_v62 }
 0x1a9   : > { %1011 = vmatmul.msk.bf16.vlgmr.msra.gmra.mxu1 %vm463_vm1, %v553_v0 }
 0x1aa   : > { %1013 = vmatmul.msk.bf16.vlgmr.msra.gmra.mxu3 %vm463_vm1, %v555_v1 }
 0x1ac   : > { %v1079_v2 = vpop.eup %1078 }
 0x1ad   : > { %v1081_v3 = vpop.eup %1080  ;;  %v550_v4 = vmul.f32 %v1079_v2, %v1208_v23  ;;  %v535_v5 = vpop.xlane.xlu1 %534 }
 0x1ae   : > { %v529_v6 = vpop.xlane.xlu0 %528  ;;  %v548_v7 = vmul.f32 %v1081_v3, %v1210_v25  ;;  %1082 = vrcp.f32 %v535_v5 }
 0x1af   : > { %v558_v8 = vpack.c.bf16 %v550_v4, %v550_v4  ;;  %1084 = vrcp.f32 %v529_v6 }
 0x1b0   : > { %v556_v9 = vpack.c.bf16 %v548_v7, %v548_v7 }
 0x1b1   : > { %1016 = vmatmul.msk.bf16.vlgmr.msrb.gmra.mxu2 %vm463_vm1, %v558_v8 }
 0x1b2   : > { %1014 = vmatmul.msk.bf16.vlgmr.msrb.gmra.mxu0 %vm463_vm1, %v556_v9 }
 0x1b4   : > { %v1083_v10 = vpop.eup %1082 }
 0x1b5   : > { %v1085_v11 = vpop.eup %1084  ;;  %v551_v12 = vmul.f32 %v1083_v10, %v1218_v29 }
 0x1b6   : > { %v549_v13 = vmul.f32 %v1085_v11, %v1216_v28 }
 0x1b7   : > { %v559_v14 = vpack.c.bf16 %v551_v12, %v551_v12 }
 0x1b8   : > { %v557_v15 = vpack.c.bf16 %v549_v13, %v549_v13 }
 0x1ba   : > { %1015 = vmatmul.msk.bf16.vlgmr.msrb.gmra.mxu1 %vm463_vm1, %v557_v15  ;;  %1017 = vmatmul.msk.bf16.vlgmr.msrb.gmra.mxu3 %vm463_vm1, %v559_v14 }
 0x215   : > { %v1252_v16 = vpop.f32.mrf.mxu0 }
 0x216   : > { %v777_v26 = vrot.slane %v1252_v16, 3  ;;  %v743_v30 = vrot.slane %v1252_v16, 1  ;;  %v760_v34 = vrot.slane %v1252_v16, 2  ;;  %v828_v36 = vrot.slane %v1252_v16, 6 }
 0x217   : > { %v794_v37 = vrot.slane %v1252_v16, 4  ;;  %v811_v39 = vrot.slane %v1252_v16, 5  ;;  %v845_v40 = vrot.slane %v1252_v16, 7 }
 0x21d   : > { %v578_v17 = vpop.f32.mrf.mxu0 }
 0x224   : > { %v1254_v18 = vpop.f32.mrf.mxu2 }
 0x225   : > { %v724_v22 = vrot.slane %v1254_v18, 6  ;;  %v745_v35 = vrot.slane %v1254_v18, 7  ;;  %v780_v43 = vrot.slane %v1254_v18, 1  ;;  %v831_v44 = vrot.slane %v1254_v18, 4 }
 0x226   : > { %v1256_v19 = vpop.f32.mrf.mxu1  ;;  %v797_v45 = vrot.slane %v1254_v18, 2  ;;  %v814_v52 = vrot.slane %v1254_v18, 3 }
 0x227   : > { %v721_v20 = vrot.slane %v1256_v19, 7  ;;  %v778_v27 = vrot.slane %v1256_v19, 2  ;;  %v761_v29 = vrot.slane %v1256_v19, 1  ;;  %v829_v31 = vrot.slane %v1256_v19, 5 }
 0x228   : > { %v795_v32 = vrot.slane %v1256_v19, 3  ;;  %v744_v38 = vsel %vm722_vm3, %v1256_v19, %v743_v30  ;;  %v812_v49 = vrot.slane %v1256_v19, 4  ;;  %v846_v53 = vrot.slane %v1256_v19, 6 }
 0x229   : > { %v723_v21 = vsel %vm722_vm3, %v721_v20, %v1252_v16  ;;  %v779_v42 = vsel %vm722_vm3, %v778_v27, %v777_v26  ;;  %v762_v46 = vsel %vm722_vm3, %v761_v29, %v760_v34  ;;  %v830_v47 = vsel %vm722_vm3, %v829_v31, %v828_v36 }
 0x22a   : > { %v726_v24 = vsel %vm725_vm4, %v724_v22, %v723_v21  ;;  %v796_v48 = vsel %vm722_vm3, %v795_v32, %v794_v37  ;;  %v746_v51 = vsel %vm725_vm4, %v745_v35, %v744_v38  ;;  %v781_v55 = vsel %vm725_vm4, %v780_v43, %v779_v42 }
 0x22b   : > { %v763_v60 = vsel %vm725_vm4, %v1254_v18, %v762_v46  ;;  %v832_v61 = vsel %vm725_vm4, %v831_v44, %v830_v47  ;;  %v798_v63 = vsel %vm725_vm4, %v797_v45, %v796_v48  ;;  %v813_v3 = vsel %vm722_vm3, %v812_v49, %v811_v39 }
 0x22c   : > { %v616_v23 = vpop.f32.mrf.mxu2  ;;  %v815_v17 = vsel %vm725_vm4, %v814_v52, %v813_v3 }
 0x22d   : > { %v1263_v25 = vpop.f32.mrf.mxu3 }
 0x22e   : > { %v597_v28 = vpop.f32.mrf.mxu1  ;;  %v727_v41 = vrot.slane %v1263_v25, 5  ;;  %v764_v50 = vrot.slane %v1263_v25, 7  ;;  %v747_v56 = vrot.slane %v1263_v25, 6  ;;  %v833_v62 = vrot.slane %v1263_v25, 3 }
 0x22f   : > { %v1271_v33 = vpop.f32.mrf.mxu0  ;;  %v799_v2 = vrot.slane %v1263_v25, 1  ;;  %v816_v8 = vrot.slane %v1263_v25, 2  ;;  %v782_v14 = vsel %vm728_vm5, %v1263_v25, %v781_v55 }
 0x230   : > { %v729_v57 = vsel %vm728_vm5, %v727_v41, %v726_v24  ;;  %v730_v58 = vrot.slane %v1271_v33, 4  ;;  %v783_v0 = vrot.slane %v1271_v33, 7  ;;  %v766_v1 = vrot.slane %v1271_v33, 6 }
 0x231   : > { %v765_v6 = vsel %vm728_vm5, %v764_v50, %v763_v60  ;;  %v749_v7 = vrot.slane %v1271_v33, 5  ;;  %v748_v12 = vsel %vm728_vm5, %v747_v56, %v746_v51  ;;  %v834_v15 = vsel %vm728_vm5, %v833_v62, %v832_v61 }
 0x232   : > { %v732_v9 = vsel %vm731_vm6, %v730_v58, %v729_v57  ;;  %v784_v21 = vsel %vm731_vm6, %v783_v0, %v782_v14  ;;  %v767_v22 = vsel %vm731_vm6, %v766_v1, %v765_v6  ;;  %v835_v23 = vrot.slane %v1271_v33, 2 }
 0x233   : > { %v800_v24 = vsel %vm728_vm5, %v799_v2, %v798_v63  ;;  %v750_v26 = vsel %vm731_vm6, %v749_v7, %v748_v12  ;;  %v817_v27 = vsel %vm728_vm5, %v816_v8, %v815_v17  ;;  %v818_v28 = vrot.slane %v1271_v33, 1 }
 0x234   : > { %v1294_v54 = vpop.f32.mrf.mxu2  ;;  %v847_v58 = vsel %vm722_vm3, %v846_v53, %v845_v40  ;;  %v850_v60 = vrot.slane %v1263_v25, 4  ;;  %v836_v61 = vsel %vm731_vm6, %v835_v23, %v834_v15  ;;  %v801_v62 = vsel %vm731_vm6, %v1271_v33, %v800_v24 }
 0x235   : > { %v635_v59 = vpop.f32.mrf.mxu3  ;;  %v736_v29 = vrot.slane %v1294_v54, 2  ;;  %v787_v37 = vrot.slane %v1294_v54, 5  ;;  %v770_v38 = vrot.slane %v1294_v54, 4  ;;  %v753_v39 = vrot.slane %v1294_v54, 3 }
 0x236   : > { %v848_v59 = vrot.slane %v1254_v18, 5  ;;  %v819_v63 = vsel %vm731_vm6, %v818_v28, %v817_v27  ;;  %v821_v0 = vrot.slane %v1294_v54, 7  ;;  %v804_v18 = vrot.slane %v1294_v54, 6 }
 0x237   : > { %v654_v4 = vpop.f32.mrf.mxu0  ;;  %v1309_v5 = vpop.f32.mrf.mxu1  ;;  %v852_v8 = vrot.slane %v1271_v33, 3  ;;  %v856_v15 = vrot.slane %v1294_v54, 1 }
 0x238   : > { %v785_v10 = vrot.slane %v1309_v5, 6  ;;  %v768_v11 = vrot.slane %v1309_v5, 5  ;;  %v751_v13 = vrot.slane %v1309_v5, 4  ;;  %v733_v20 = vrot.slane %v1309_v5, 3 }
 0x239   : > { %v837_v45 = vrot.slane %v1309_v5, 1  ;;  %v802_v56 = vrot.slane %v1309_v5, 7  ;;  %v820_v25 = vsel %vm734_vm7, %v1309_v5, %v819_v63  ;;  %v849_v3 = vsel %vm725_vm4, %v848_v59, %v847_v58 }
 0x23a   : > { %v786_v31 = vsel %vm734_vm7, %v785_v10, %v784_v21  ;;  %v769_v32 = vsel %vm734_vm7, %v768_v11, %v767_v22  ;;  %v752_v34 = vsel %vm734_vm7, %v751_v13, %v750_v26  ;;  %v735_v35 = vsel %vm734_vm7, %v733_v20, %v732_v9 }
 0x23b   : > { %v738_v41 = vsel %vm737_vm8, %v736_v29, %v735_v35  ;;  %v788_v47 = vsel %vm737_vm8, %v787_v37, %v786_v31  ;;  %v771_v48 = vsel %vm737_vm8, %v770_v38, %v769_v32  ;;  %v754_v49 = vsel %vm737_vm8, %v753_v39, %v752_v34 }
 0x23c   : > { %v692_v30 = vpop.f32.mrf.mxu2  ;;  %v838_v1 = vsel %vm734_vm7, %v837_v45, %v836_v61  ;;  %v803_v19 = vsel %vm734_vm7, %v802_v56, %v801_v62  ;;  %v851_v7 = vsel %vm728_vm5, %v850_v60, %v849_v3  ;;  %v822_v11 = vsel %vm737_vm8, %v821_v0, %v820_v25 }
 0x23d   : > { %v709_v36 = vpop.f32.mrf.mxu3  ;;  %v839_v4 = vsel %vm737_vm8, %v1294_v54, %v838_v1  ;;  %v805_v6 = vsel %vm737_vm8, %v804_v18, %v803_v19  ;;  %v854_v12 = vrot.slane %v1309_v5, 2  ;;  %v853_v14 = vsel %vm731_vm6, %v852_v8, %v851_v7 }
 0x23e   : > { %v789_v42 = vrot.slane %v709_v36, 4  ;;  %v772_v43 = vrot.slane %v709_v36, 3  ;;  %v755_v44 = vrot.slane %v709_v36, 2  ;;  %v739_v50 = vrot.slane %v709_v36, 1 }
 0x23f   : > { %v673_v46 = vpop.f32.mrf.mxu1  ;;  %v840_v16 = vrot.slane %v709_v36, 7  ;;  %v806_v2 = vrot.slane %v709_v36, 5  ;;  %v823_v53 = vrot.slane %v709_v36, 6  ;;  %v855_v33 = vsel %vm734_vm7, %v854_v12, %v853_v14 }
 0x240   : > { %v790_v51 = vsel %vm740_vm9, %v789_v42, %v788_v47  ;;  %v773_v52 = vsel %vm740_vm9, %v772_v43, %v771_v48  ;;  %v756_v55 = vsel %vm740_vm9, %v755_v44, %v754_v49  ;;  %v741_v57 = vsel %vm740_vm9, %v739_v50, %v738_v41 }
 0x241   : > { %791 = vrot.lane.b32.xlu0 %v790_v51, %s1110_s26  ;;  %774 = vrot.lane.b32.xlu2 %v773_v52, %s1111_s27  ;;  %v841_v9 = vsel %vm740_vm9, %v840_v16, %v839_v4  ;;  %v807_v10 = vsel %vm740_vm9, %v806_v2, %v805_v6  ;;  %v824_v13 = vsel %vm740_vm9, %v823_v53, %v822_v11 }
 0x242   : > { %757 = vrot.lane.b32.xlu1 %v756_v55, %s1112_s28  ;;  %v857_v17 = vsel %vm737_vm8, %v856_v15, %v855_v33 }
 0x243   : > { %v858_v20 = vsel %vm740_vm9, %v709_v36, %v857_v17 }
 0x245   : > { %v711_v40 = vpop.f32.mrf.mxu3 }
 0x249   : > { %842 = vrot.lane.b32.xlu0 %v841_v9, %s1113_s29  ;;  %808 = vrot.lane.b32.xlu2 %v807_v10, %s1114_s30 }
 0x24a   : > { %825 = vrot.lane.b32.xlu1 %v824_v13, %s1115_s4 }
 0x251   : > { %859 = vrot.lane.b32.xlu2 %v858_v20, %s1116_s5 }
 0x29b   : > { %v775_v5 = vpop.permute.xlu2 %774 }
 0x2a3   : > { %v809_v22 = vpop.permute.xlu2 %808 }
 0x2ab   : > { %v860_v31 = vpop.permute.xlu2 %859 }
 0x2b3   : > { %v792_v21 = vpop.permute.xlu0 %791 }
 0x2b4   : > { %v758_v23 = vpop.permute.xlu1 %757 }
 0x2b5   : > { %v862_v24 = vsel %vm302_vm0, %v741_v57, %v758_v23 }
 0x2b6   : > { %v863_v26 = vsel %vm463_vm1, %v862_v24, %v775_v5 }
 0x2b7   : > { %v865_v27 = vsel %vm864_vm10, %v863_v26, %v792_v21 }
 0x2b8   : > { %v867_v29 = vsel %vm866_vm11, %v865_v27, %v809_v22 }
 0x2bb   : > { %v843_v54 = vpop.permute.xlu0 %842 }
 0x2bc   : > { %v826_v28 = vpop.permute.xlu1 %825 }
 0x2bd   : > { %v869_v30 = vsel %vm868_vm12, %v867_v29, %v826_v28 }
 0x2be   : > { %v871_v32 = vsel %vm870_vm13, %v869_v30, %v843_v54 }
 0x2bf   : > { %v873_v34 = vsel %vm872_vm14, %v871_v32, %v860_v31 }
 0x2c0   : > { %v874_v35 = vpack.c.bf16 %v873_v34, %v873_v34 }
 0x2c2   : > { %876 = vst.msk [vmem:[%s276_s9] sm:$0xf] %vm875_vm15, %v874_v35 }
 0x2c3 PF: > { %s13_s14 = sadd.s32 1, %s1108_s14   ;;  %s1401_s12 = smov %s1104_s13 }
 0x2c4   : > { %p10_p5 = scmp.ge.s32.totalorder %s13_s14, 4   ;;  %s1402_s13 = smov %s1404_s15 }
 0x2c6   :  { %12 = sbr.rel (!%p10_p5) target bundleno = 2 (0x2), region = 68 }

// kernel: cross_attention_forward.9
= control target key start
LH: loop header
LB: loop body
LE: loop exit
PB: predicated region body
PF: predicated region fallthrough
CT: control target
= control target key end

     0   :  { %s165_s0 = inlined_call_operand.vmem [shape: bf16[16,32], index: 0, kind: input, shape index: {}]   ;;  %s166_s1 = inlined_call_operand.vmem [shape: bf16[32,32], index: 1, kind: input, shape index: {}]   ;;  %s167_s2 = inlined_call_operand.vmem [shape: f32[1,32], index: 2, kind: input, shape index: {}]   ;;  %s168_s3 = inlined_call_operand.hbm [shape: f32[16,32], index: 3, kind: output, shape index: {}]  }
   0x1   :  { %v96_v0 = vld [vmem:[%s166_s1 + $0x8] sm:$0xff] }
   0x2   :  { %8 = vsyncpa [#allocation3], 0  ;;  %53 = vmatpush.bf16.msra.mxu0 %v96_v0  ;;  %v95_v1 = vld [vmem:[%s166_s1] sm:$0xff]  ;;  %vm43_vm0 = vcmask 261120   ;;  %s127_s20 = smov [#allocation2]   ;;  %s69_s1 = sshll.u32 %s168_s3, 4  ;;  %s70_s1 = int_to_ptr.hbm [resolvable:$true] %s69_s1 }
   0x3   :  { %v94_v2 = vld [vmem:[%s165_s0] sm:$0xff]  ;;  %s67_s21 = sshll.u32 %s127_s20, 4  ;;  %s128_s0 = smov 128   ;;  %s68_s21 = int_to_ptr.vmem [resolvable:$true] %s67_s21 }
   0x4   :  { %v100_v3 = vld [vmem:[%s167_s2] ss:$0 sm:$0xff]  ;;  %s129_s24 = smov 8  }
   0x6   :  { %54 = vmatpush.bf16.msra.mxu0 %v95_v1 }
   0x9   :  { %93 = vmatmul.msk.bf16.vlgmr.msra.gmra.mxu0 %vm43_vm0, %v94_v2 }
  0x86   :  { %v56_v4 = vpop.f32.mrf.mxu0 }
  0x87   :  { %v57_v5 = vadd.f32 %v100_v3, %v56_v4 }
  0x89   :  { %61 = vst.msk [vmem:[#allocation2] sm:$0xff] %vm43_vm0, %v57_v5 }
  0x8e   :  { %v58_v6 = vpop.f32.mrf.mxu0 }
  0x8f   :  { %v59_v7 = vadd.f32 %v100_v3, %v58_v6 }
  0x91   :  { %62 = vst.msk [vmem:[#allocation2 + $0x8] sm:$0xff] %vm43_vm0, %v59_v7 }
  0x92   :  { %75 = dma.vmem_to_hbm [thread:$0]  %s68_s21, 256, %s70_s1, [#allocation3], %s128_s0, %s128_s0, %s129_s24  }
  0x93   :  { %125 = dma.done.wait [#allocation3], 256  }
  0x94   :  { %126 = vsyncadd [#allocation3], 4294967040 }
  0x95   :  { %80 = vsyncpa [#allocation3], 1 }

// kernel: cross_attention_forward.7
= control target key start
LH: loop header
LB: loop body
LE: loop exit
PB: predicated region body
PF: predicated region fallthrough
CT: control target
= control target key end

     0   :  { %s2247_s0 = inlined_call_operand.vmem [shape: bf16[2,8,8,4], index: 0, kind: input, shape index: {}]   ;;  %s2248_s1 = inlined_call_operand.vmem [shape: bf16[2,8,8,4], index: 1, kind: input, shape index: {}]   ;;  %s2249_s2 = inlined_call_operand.vmem [shape: bf16[2,8,8,4], index: 2, kind: input, shape index: {}]   ;;  %s2250_s3 = inlined_call_operand.vmem [shape: f32[2,8,8,1], index: 3, kind: input, shape index: {}]   ;;  %s2251_s4 = inlined_call_operand.vmem [shape: bf16[32,32], index: 4, kind: input, shape index: {}]   ;;  %s2252_s5 = inlined_call_operand.vmem [shape: f32[1,32], index: 5, kind: input, shape index: {}]   ;;  %s2253_s6 = inlined_call_operand.hbm [shape: f32[2,8,32], index: 6, kind: output, shape index: {0}]   ;;  %s2254_s7 = inlined_call_operand.hbm [shape: bf16[2,8,8,8], index: 7, kind: output, shape index: {1}]   ;;  %s2255_s8 = inlined_call_operand.hbm [shape: bf16[2,8,8,8], index: 8, kind: output, shape index: {2}]  }
   0x1   :  { %2262 = sst [smem:[#allocation9_spill]] %s2247_s0 }
   0x2   :  { %2263 = sst [smem:[#allocation10_spill]] %s2248_s1 }
   0x3   :  { %2264 = sst [smem:[#allocation11_spill]] %s2249_s2 }
   0x4   :  { %2265 = sst [smem:[#allocation12_spill]] %s2250_s3 }
   0x5   :  { %2266 = sst [smem:[#allocation13_spill]] %s2251_s4 }
   0x6   :  { %14 = vsyncpa [#allocation3], 0 }
   0x7   :  { %16 = vsyncpa [#allocation3 + $0x1], 0 }
   0x8   :  { %17 = vsyncpa [#allocation5], 0 }
   0x9   :  { %19 = vsyncpa [#allocation5 + $0x1], 0  ;;  %s1870_s27 = smov 0   ;;  %s1872_s28 = smov 0  }
   0xa   :  { %s1874_s29 = smov 0   ;;  %s1876_s30 = smov 0  }
   0xb   :  { %s1878_s9 = smov 0   ;;  %s1880_s10 = smov 0  }
   0xc LB: > { %s1475_s11 = sadd.s32 4294967295, %s1814_s10   ;;  %s2256_s12 = sadd.s32 4294967294, %s1814_s10   ;;  %s1814_s10 = sphi %s1880_s10, %s25_s10   ;;  %s1810_s9 = sphi %s1878_s9, %s2293_s9   ;;  %s1806_s30 = sphi %s1876_s30, %s2292_s30   ;;  %s1802_s29 = sphi %s1874_s29, %s2291_s29   ;;  %s1798_s28 = sphi %s1872_s28, %s2290_s28   ;;  %s1794_s27 = sphi %s1870_s27, %s2289_s27  }
   0xd   : > { %s37_s13 = sadd.s32 1, %s1810_s9  ;;  %s196_s14 = sadd.s32 1, %s1802_s29 }
   0xe   : > { %p39_p0 = scmp.ge.s32.totalorder %s37_s13, 2  ;;  %p206_p1 = scmp.ne.s32.totalorder %s1802_s29, %s1798_s28 }
   0xf   : > { %p207_p2 = scmp.eq.s32.totalorder %s1475_s11, 1  ;;  %p212_p3 = scmp.ne.s32.totalorder %s1798_s28, %s1794_s27 }
  0x10   : > { %s2295_s13 = smov (%p39_p0, %s37_s13), 0  ;;  %p213_p5 = scmp.eq.s32.totalorder %s2256_s12, 1 }
  0x11   : > { %p1912_p4 = por %p207_p2, %p206_p1  ;;  %s191_s16 = ssub.s32 %s1810_s9, %s2295_s13 }
  0x12   : > { %p1479_p6 = scmp.ge.s32.totalorder %s1814_s10, 1  ;;  %p194_p7 = scmp.eq.s32.totalorder %s191_s16, 0 }
  0x13   : > { %p1921_p8 = por %p213_p5, %p212_p3  ;;  %p331_p9 = scmp.lt.s32.totalorder %s1814_s10, 3 }
  0x14   : > { %s1927_s18 = scalar_select %p194_p7, %s1802_s29, %s196_s14  }
  0x15   : > { %p332_p10 = pnand %p1479_p6, %p331_p9 }
  0x16   : > { %p396_p11 = scmp.lt.s32.totalorder (!%p332_p10), %s1806_s30, 1  ;;  %s2269_s1 = sld [smem:[#allocation10_spill]] (!%p332_p10) }
  0x17   : > { %335 = sbr.rel (%p332_p10) target bundleno = 839 (0x347), region = 44  ;;  %s2270_s0 = sld [smem:[#allocation9_spill]] (!%p332_p10) }
  0x18   : > { %s2271_s2 = sld [smem:[#allocation11_spill]] (!%p332_p10)  ;;  %s1816_s16 = smov (!%p332_p10), 8  }
  0x19   : > { %s2272_s3 = sld [smem:[#allocation12_spill]] (!%p332_p10)  ;;  %s1821_s25 = smov (!%p332_p10), 24  }
  0x1a   : > { %s2283_s4 = sld [smem:[#allocation13_spill]] (!%p332_p10) }
  0x1c   : > { %s1931_s19 = scalar_select %p396_p11, %s1806_s30, 1  ;;  %vm447_vm0 = vcmask 31744   ;;  %vm608_vm1 = vcmask 64512   ;;  %vm1000_vm2 = vcmask 1043456   ;;  %vm705_vm3 = vcmask 60416  }
  0x1e   : > { %s1934_s20 = sshll.u32 %s1931_s19, 5  ;;  %s1529_s24 = sshll.u32 %s1931_s19, 6 }
  0x1f   : > { %s408_s23 = scalar_lea.vmem %s2269_s1, %s1934_s20  ;;  %s403_s26 = scalar_lea.vmem %s2270_s0, %s1934_s20 }
  0x20   : > { %v431_v0 = vld [vmem:[%s408_s23] sm:$0xf]  ;;  %v432_v1 = vld [vmem:[%s408_s23 + $0x4] sm:$0xf]  ;;  %v433_v2 = vld [vmem:[%s408_s23 + $0x8] sm:$0xf]  ;;  %s413_s21 = scalar_lea.vmem %s2271_s2, %s1934_s20  ;;  %s2058_s14 = scalar_lea.vmem %s2272_s3, %s1529_s24 }
  0x21   : > { %v452_v3 = vsel %vm447_vm0, %v431_v0, 0  ;;  %v471_v4 = vsel %vm447_vm0, %v432_v1, 0  ;;  %v490_v5 = vsel %vm447_vm0, %v433_v2, 0  ;;  %v434_v6 = vld [vmem:[%s408_s23 + $0xc] sm:$0xf]  ;;  %s2011_s20 = sand.u32 1, %s1798_s28  }
  0x22   : > { %461 = vmatpush.bf16.xpose.msra.mxu0 %v452_v3  ;;  %480 = vmatpush.bf16.xpose.msra.mxu1 %v471_v4  ;;  %v509_v7 = vsel %vm447_vm0, %v434_v6, 0  ;;  %v437_v8 = vld [vmem:[%s408_s23 + $0x18] sm:$0xf]  ;;  %v436_v10 = vld [vmem:[%s408_s23 + $0x14] sm:$0xf]  ;;  %s2257_s22 = sshll.u32 %s2011_s20, 5 }
  0x23   : > { %499 = vmatpush.bf16.xpose.msra.mxu2 %v490_v5  ;;  %518 = vmatpush.bf16.xpose.msra.mxu3 %v509_v7  ;;  %v566_v9 = vsel %vm447_vm0, %v437_v8, 0  ;;  %v435_v11 = vld [vmem:[%s408_s23 + $0x10] sm:$0xf]  ;;  %v547_v12 = vsel %vm447_vm0, %v436_v10, 0  ;;  %v423_v14 = vld [vmem:[%s403_s26] sm:$0xf] }
  0x24   : > { %v528_v13 = vsel %vm447_vm0, %v435_v11, 0  ;;  %v424_v15 = vld [vmem:[%s403_s26 + $0x4] sm:$0xf]  ;;  %v438_v16 = vld [vmem:[%s408_s23 + $0x1c] sm:$0xf]  ;;  %s2019_s23 = scalar_lea.vmem [#allocation4], %s2257_s22 }
  0x25   : > { %v425_v17 = vld [vmem:[%s403_s26 + $0x8] sm:$0xf]  ;;  %v426_v18 = vld [vmem:[%s403_s26 + $0xc] sm:$0xf]  ;;  %v585_v19 = vsel %vm447_vm0, %v438_v16, 0  ;;  %s2258_s19 = smov 4  }
  0x26   : > { %v428_v20 = vld [vmem:[%s403_s26 + $0x14] sm:$0xf]  ;;  %v427_v21 = vld [vmem:[%s403_s26 + $0x10] sm:$0xf]  ;;  %v429_v22 = vld [vmem:[%s403_s26 + $0x18] sm:$0xf] }
  0x27   : > { %v430_v23 = vld [vmem:[%s403_s26 + $0x1c] sm:$0xf]  ;;  %s1820_s24 = smov 16   ;;  %s1822_s26 = smov 20  }
  0x29   : > { %1491 = vmatmul.msk.bf16.vlgmr.msra.gmra.mxu0 %vm447_vm0, %v423_v14  ;;  %1492 = vmatmul.msk.bf16.vlgmr.msra.gmra.mxu1 %vm447_vm0, %v424_v15 }
  0x2a   : > { %556 = vmatpush.bf16.xpose.msrb.mxu1 %v547_v12  ;;  %537 = vmatpush.bf16.xpose.msrb.mxu0 %v528_v13 }
  0x2b   : > { %575 = vmatpush.bf16.xpose.msrb.mxu2 %v566_v9  ;;  %594 = vmatpush.bf16.xpose.msrb.mxu3 %v585_v19 }
  0x2c   : > { %1493 = vmatmul.msk.bf16.vlgmr.msra.gmra.mxu2 %vm447_vm0, %v425_v17  ;;  %1494 = vmatmul.msk.bf16.vlgmr.msra.gmra.mxu3 %vm447_vm0, %v426_v18 }
  0x39   : > { %1496 = vmatmul.msk.bf16.vlgmr.msrb.gmra.mxu1 %vm447_vm0, %v428_v20  ;;  %1495 = vmatmul.msk.bf16.vlgmr.msrb.gmra.mxu0 %vm447_vm0, %v427_v21 }
  0x3c   : > { %1497 = vmatmul.msk.bf16.vlgmr.msrb.gmra.mxu2 %vm447_vm0, %v429_v22  ;;  %1498 = vmatmul.msk.bf16.vlgmr.msrb.gmra.mxu3 %vm447_vm0, %v430_v23 }
  0xa6   : > { %v463_v24 = vpop.f32.mrf.mxu0  ;;  %v482_v25 = vpop.f32.mrf.mxu1 }
  0xa7   : > { %v600_v26 = vmul.f32 0.5, %v463_v24  ;;  %v601_v28 = vmul.f32 0.5, %v482_v25 }
  0xa9   : > { %v609_v27 = vsel %vm608_vm1, %v600_v26, -inf  ;;  %v612_v34 = vsel %vm608_vm1, %v601_v28, -inf }
  0xaa   : > { %610 = vmax.xlane.f32.xlu1 %v609_v27 }
  0xae   : > { %v465_v32 = vpop.f32.mrf.mxu0  ;;  %v484_v33 = vpop.f32.mrf.mxu1 }
  0xaf   : > { %v501_v29 = vpop.f32.mrf.mxu2  ;;  %v520_v30 = vpop.f32.mrf.mxu3  ;;  %v439_v32 = vld [vmem:[%s413_s21] sm:$0xf] }
  0xb0   : > { %v602_v31 = vmul.f32 0.5, %v501_v29  ;;  %v603_v36 = vmul.f32 0.5, %v520_v30  ;;  %v1002_v33 = vsel %vm1000_vm2, %v439_v32, 0 }
  0xb1   : > { %1011 = vmatpush.bf16.msra.mxu0 %v1002_v33 }
  0xb2   : > { %v615_v35 = vsel %vm608_vm1, %v602_v31, -inf  ;;  %613 = vmax.xlane.f32.xlu1 %v612_v34  ;;  %v618_v40 = vsel %vm608_vm1, %v603_v36, -inf  ;;  %v441_v34 = vld [vmem:[%s413_s21 + $0x8] sm:$0xf] }
  0xb3   : > { %616 = vmax.xlane.f32.xlu0 %v615_v35  ;;  %v1040_v35 = vsel %vm1000_vm2, %v441_v34, 0 }
  0xb4   : > { %1049 = vmatpush.bf16.msra.mxu2 %v1040_v35 }
  0xb6   : > { %v558_v39 = vpop.f32.mrf.mxu1  ;;  %v539_v41 = vpop.f32.mrf.mxu0 }
  0xb7   : > { %v503_v37 = vpop.f32.mrf.mxu2  ;;  %v522_v38 = vpop.f32.mrf.mxu3  ;;  %v605_v42 = vmul.f32 0.5, %v558_v39  ;;  %v604_v44 = vmul.f32 0.5, %v539_v41 }
  0xb8   : > { %v442_v37 = vld [vmem:[%s413_s21 + $0xc] sm:$0xf] }
  0xb9   : > { %v624_v43 = vsel %vm608_vm1, %v605_v42, -inf  ;;  %v621_v48 = vsel %vm608_vm1, %v604_v44, -inf  ;;  %v1059_v39 = vsel %vm1000_vm2, %v442_v37, 0 }
  0xba   : > { %625 = vmax.xlane.f32.xlu1 %v624_v43  ;;  %1068 = vmatpush.bf16.msra.mxu3 %v1059_v39 }
  0xbb   : > { %619 = vmax.xlane.f32.xlu0 %v618_v40  ;;  %v445_v40 = vld [vmem:[%s413_s21 + $0x18] sm:$0xf] }
  0xbc   : > { %v1116_v41 = vsel %vm1000_vm2, %v445_v40, 0 }
  0xbd   : > { %1125 = vmatpush.bf16.msrb.mxu2 %v1116_v41 }
  0xbe   : > { %v560_v49 = vpop.f32.mrf.mxu1  ;;  %v541_v50 = vpop.f32.mrf.mxu0 }
  0xbf   : > { %v577_v45 = vpop.f32.mrf.mxu2  ;;  %v596_v46 = vpop.f32.mrf.mxu3  ;;  %v446_v49 = vld [vmem:[%s413_s21 + $0x1c] sm:$0xf] }
  0xc0   : > { %v606_v47 = vmul.f32 0.5, %v577_v45  ;;  %v607_v52 = vmul.f32 0.5, %v596_v46  ;;  %v444_v45 = vld [vmem:[%s413_s21 + $0x14] sm:$0xf] }
  0xc1   : > { %v1097_v46 = vsel %vm1000_vm2, %v444_v45, 0 }
  0xc2   : > { %v627_v51 = vsel %vm608_vm1, %v606_v47, -inf  ;;  %v630_v55 = vsel %vm608_vm1, %v607_v52, -inf }
  0xc3   : > { %628 = vmax.xlane.f32.xlu2 %v627_v51  ;;  %622 = vmax.xlane.f32.xlu0 %v621_v48  ;;  %v1135_v51 = vsel %vm1000_vm2, %v446_v49, 0 }
  0xc4   : > { %1144 = vmatpush.bf16.msrb.mxu3 %v1135_v51 }
  0xc7   : > { %v579_v53 = vpop.f32.mrf.mxu2  ;;  %v598_v54 = vpop.f32.mrf.mxu3 }
  0xcb   : > { %631 = vmax.xlane.f32.xlu2 %v630_v55 }
 0x11d   : > { %v611_v56 = vpop.xlane.xlu1 %610 }
 0x11e   : > { %v633_v57 = vsub.f32 %v600_v26, %v611_v56 }
 0x120   : > { %v641_v58 = vmul.f32 1.442695, %v633_v57 }
 0x122   : > { %1612 = vpow2.f32 %v641_v58 }
 0x125   : > { %v614_v61 = vpop.xlane.xlu1 %613 }
 0x126   : > { %v617_v59 = vpop.xlane.xlu0 %616  ;;  %v634_v63 = vsub.f32 %v601_v28, %v614_v61 }
 0x127   : > { %v635_v60 = vsub.f32 %v602_v31, %v617_v59 }
 0x128   : > { %v1968_v0 = vpop.eup %1612  ;;  %v643_v2 = vmul.f32 1.442695, %v634_v63 }
 0x129   : > { %v645_v62 = vmul.f32 1.442695, %v635_v60  ;;  %v657_v1 = vsel %vm608_vm1, %v1968_v0, 0.0 }
 0x12a   : > { %658 = vadd.xlane.f32.xlu1 %v657_v1 }
 0x12b   : > { %1614 = vpow2.f32 %v645_v62 }
 0x12c   : > { %1616 = vpow2.f32 %v643_v2 }
 0x12d   : > { %v626_v8 = vpop.xlane.xlu1 %625 }
 0x12e   : > { %v620_v3 = vpop.xlane.xlu0 %619  ;;  %v638_v15 = vsub.f32 %v605_v42, %v626_v8  ;;  %v443_v42 = vld [vmem:[%s413_s21 + $0x10] sm:$0xf] }
 0x12f   : > { %v636_v4 = vsub.f32 %v603_v36, %v620_v3  ;;  %v440_v36 = vld [vmem:[%s413_s21 + $0x4] sm:$0xf]  ;;  %s1819_s21 = smov 12  }
 0x130   : > { %v651_v20 = vmul.f32 1.442695, %v638_v15  ;;  %v1021_v38 = vsel %vm1000_vm2, %v440_v36, 0 }
 0x131   : > { %v1972_v5 = vpop.eup %1614  ;;  %v647_v6 = vmul.f32 1.442695, %v636_v4  ;;  %1030 = vmatpush.bf16.msra.mxu1 %v1021_v38 }
 0x132   : > { %v663_v7 = vsel %vm608_vm1, %v1972_v5, 0.0  ;;  %v1976_v11 = vpop.eup %1616 }
 0x133   : > { %1618 = vpow2.f32 %v647_v6  ;;  %664 = vadd.xlane.f32.xlu2 %v663_v7  ;;  %v660_v18 = vsel %vm608_vm1, %v1976_v11, 0.0 }
 0x135   : > { %1106 = vmatpush.bf16.msrb.mxu1 %v1097_v46 }
 0x136   : > { %v629_v9 = vpop.xlane.xlu2 %628  ;;  %v623_v10 = vpop.xlane.xlu0 %622 }
 0x137   : > { %v639_v12 = vsub.f32 %v606_v47, %v629_v9  ;;  %v637_v13 = vsub.f32 %v604_v44, %v623_v10  ;;  %v1078_v44 = vsel %vm1000_vm2, %v443_v42, 0 }
 0x138   : > { %1087 = vmatpush.bf16.msrb.mxu0 %v1078_v44 }
 0x139   : > { %v1978_v14 = vpop.eup %1618  ;;  %v653_v16 = vmul.f32 1.442695, %v639_v12  ;;  %v649_v17 = vmul.f32 1.442695, %v637_v13 }
 0x13a   : > { %v666_v19 = vsel %vm608_vm1, %v1978_v14, 0.0 }
 0x13b   : > { %1620 = vpow2.f32 %v653_v16  ;;  %661 = vadd.xlane.f32.xlu2 %v660_v18  ;;  %667 = vadd.xlane.f32.xlu0 %v666_v19  ;;  %v714_v19 = vld [vmem:[%s2058_s14] sm:$0xff] }
 0x13c   : > { %1622 = vpow2.f32 %v649_v17  ;;  %vm727_vm4 = vweird.f32 %v714_v19  ;;  %v731_v35 = vand.u32 2147483647, %v714_v19  ;;  %v733_v38 = vand.u32 2147483648, %v714_v19 }
 0x13d   : > { %1624 = vpow2.f32 %v651_v20  ;;  %v2062_v20 = vld [vmem:[%s2058_s14 + $0x18] sm:$0xff] }
 0x13e   : > { %v632_v21 = vpop.xlane.xlu2 %631  ;;  %vm2079_vm9 = vcmp.eq.f32.partialorder %v731_v35, 8.507059e+37  ;;  %vm772_vm12 = vweird.f32 %v2062_v20  ;;  %v716_v35 = vld [vmem:[%s2058_s14 + $0x10] sm:$0xff] }
 0x13f   : > { %v640_v22 = vsub.f32 %v607_v52, %v632_v21  ;;  %v763_v49 = vand.u32 2147483648, %v716_v35 }
 0x141   : > { %v1984_v23 = vpop.eup %1620  ;;  %v655_v24 = vmul.f32 1.442695, %v640_v22  ;;  %v1817_v22 = vmov 0  }
 0x142   : > { %v1986_v25 = vpop.eup %1622  ;;  %v675_v26 = vsel %vm608_vm1, %v1984_v23, 0.0  ;;  %1608 = vset.pattern.permute.xlu1 %v1817_v22  ;;  %1609 = vset.pattern.permute.xlu0 %v1817_v22 }
 0x143   : > { %1626 = vpow2.f32 %v655_v24  ;;  %676 = vadd.xlane.f32.xlu0 %v675_v26  ;;  %v669_v27 = vsel %vm608_vm1, %v1986_v25, 0.0  ;;  %v1992_v28 = vpop.eup %1624  ;;  %1610 = vset.pattern.permute.xlu2 %v1817_v22  ;;  %v2068_v24 = vld [vmem:[%s2058_s14 + $0x28] sm:$0xff] }
 0x144   : > { %670 = vadd.xlane.f32.xlu2 %v669_v27  ;;  %v672_v31 = vsel %vm608_vm1, %v1992_v28, 0.0  ;;  %vm802_vm2 = vweird.f32 %v2068_v24 }
 0x149   : > { %v1994_v29 = vpop.eup %1626 }
 0x14a   : > { %v678_v30 = vsel %vm608_vm1, %v1994_v29, 0.0 }
 0x14b   : > { %679 = vadd.xlane.f32.xlu1 %v678_v30  ;;  %673 = vadd.xlane.f32.xlu0 %v672_v31 }
 0x19d   : > { %v659_v43 = vpop.xlane.xlu1 %658 }
 0x19e   : > { %1628 = vrcp.f32 %v659_v43 }
 0x1a4   : > { %v1629_v47 = vpop.eup %1628 }
 0x1a5   : > { %v689_v50 = vmul.f32 %v1629_v47, %v1968_v0 }
 0x1a6   : > { %v665_v48 = vpop.xlane.xlu2 %664 }
 0x1a7   : > { %1630 = vrcp.f32 %v665_v48  ;;  %v697_v52 = vpack.c.bf16 %v689_v50, %v689_v50  ;;  %v734_v50 = vor.u32 1.1754944e-38, %v733_v38 }
 0x1a9   : > { %706 = vst.msk [vmem:[%s2019_s23] sm:$0xf] %vm705_vm3, %v697_v52  ;;  %1499 = vmatmul.msk.bf16.vlgmr.msra.gmra.mxu0 %vm608_vm1, %v697_v52  ;;  %v761_v52 = vand.u32 2147483647, %v716_v35 }
 0x1ad   : > { %v1631_v53 = vpop.eup %1630 }
 0x1ae   : > { %v691_v54 = vmul.f32 %v1631_v53, %v1972_v5  ;;  %v662_v55 = vpop.xlane.xlu2 %661  ;;  %v668_v56 = vpop.xlane.xlu0 %667 }
 0x1af   : > { %1632 = vrcp.f32 %v662_v55 }
 0x1b0   : > { %v699_v57 = vpack.c.bf16 %v691_v54, %v691_v54  ;;  %1634 = vrcp.f32 %v668_v56 }
 0x1b2   : > { %708 = vst.msk [vmem:[%s2019_s23 + $0x8] sm:$0xf] %vm705_vm3, %v699_v57  ;;  %1501 = vmatmul.msk.bf16.vlgmr.msra.gmra.mxu2 %vm608_vm1, %v699_v57 }
 0x1b5   : > { %v1633_v58 = vpop.eup %1632 }
 0x1b6   : > { %v1635_v59 = vpop.eup %1634  ;;  %v690_v60 = vmul.f32 %v1633_v58, %v1976_v11  ;;  %v677_v61 = vpop.xlane.xlu0 %676 }
 0x1b7   : > { %v692_v62 = vmul.f32 %v1635_v59, %v1978_v14  ;;  %v671_v63 = vpop.xlane.xlu2 %670  ;;  %1636 = vrcp.f32 %v677_v61 }
 0x1b8   : > { %v698_v0 = vpack.c.bf16 %v690_v60, %v690_v60  ;;  %1638 = vrcp.f32 %v671_v63 }
 0x1b9   : > { %v700_v1 = vpack.c.bf16 %v692_v62, %v692_v62  ;;  %v778_v62 = vand.u32 2147483648, %v2062_v20 }
 0x1ba   : > { %707 = vst.msk [vmem:[%s2019_s23 + $0x4] sm:$0xf] %vm705_vm3, %v698_v0  ;;  %1500 = vmatmul.msk.bf16.vlgmr.msra.gmra.mxu1 %vm608_vm1, %v698_v0 }
 0x1bb   : > { %709 = vst.msk [vmem:[%s2019_s23 + $0xc] sm:$0xf] %vm705_vm3, %v700_v1  ;;  %1502 = vmatmul.msk.bf16.vlgmr.msra.gmra.mxu3 %vm608_vm1, %v700_v1  ;;  %v776_v1 = vand.u32 2147483647, %v2062_v20 }
 0x1bd   : > { %v1637_v2 = vpop.eup %1636  ;;  %vm777_vm15 = vcmp.eq.f32.partialorder %v776_v1, 8.507059e+37 }
 0x1be   : > { %v1639_v3 = vpop.eup %1638  ;;  %v695_v4 = vmul.f32 %v1637_v2, %v1984_v23  ;;  %v680_v5 = vpop.xlane.xlu1 %679  ;;  %v715_v23 = vld [vmem:[%s2058_s14 + $0x8] sm:$0xff] }
 0x1bf   : > { %v674_v6 = vpop.xlane.xlu0 %673  ;;  %v693_v7 = vmul.f32 %v1639_v3, %v1986_v25  ;;  %1640 = vrcp.f32 %v680_v5  ;;  %v746_v39 = vand.u32 2147483647, %v715_v23  ;;  %v748_v40 = vand.u32 2147483648, %v715_v23 }
 0x1c0   : > { %v703_v8 = vpack.c.bf16 %v695_v4, %v695_v4  ;;  %1642 = vrcp.f32 %v674_v6  ;;  %vm742_vm6 = vweird.f32 %v715_v23 }
 0x1c1   : > { %v701_v9 = vpack.c.bf16 %v693_v7, %v693_v7  ;;  %1644 = vrcp.f32 %v714_v19  ;;  %vm2087_vm11 = vcmp.eq.f32.partialorder %v746_v39, 8.507059e+37  ;;  %v749_v53 = vor.u32 1.1754944e-38, %v748_v40 }
 0x1c2   : > { %712 = vst.msk [vmem:[%s2019_s23 + $0x18] sm:$0xf] %vm705_vm3, %v703_v8  ;;  %1505 = vmatmul.msk.bf16.vlgmr.msrb.gmra.mxu2 %vm608_vm1, %v703_v8  ;;  %1646 = vrcp.f32 %v2062_v20  ;;  %v779_v8 = vor.u32 1.1754944e-38, %v778_v62 }
 0x1c3   : > { %710 = vst.msk [vmem:[%s2019_s23 + $0x10] sm:$0xf] %vm705_vm3, %v701_v9  ;;  %1503 = vmatmul.msk.bf16.vlgmr.msrb.gmra.mxu0 %vm608_vm1, %v701_v9  ;;  %1648 = vrcp.f32 %v715_v23 }
 0x1c4   : > { %1650 = vrcp.f32 %v2068_v24 }
 0x1c5   : > { %v1641_v10 = vpop.eup %1640 }
 0x1c6   : > { %v1643_v11 = vpop.eup %1642  ;;  %v696_v12 = vmul.f32 %v1641_v10, %v1994_v29 }
 0x1c7   : > { %v694_v13 = vmul.f32 %v1643_v11, %v1992_v28  ;;  %v1645_v25 = vpop.eup %1644 }
 0x1c8   : > { %v704_v14 = vpack.c.bf16 %v696_v12, %v696_v12  ;;  %v2070_v27 = vpop.eup %1646  ;;  %v723_v29 = vmul.f32 %v1645_v25, %v714_v19  ;;  %vm728_vm5 = vweird.f32 %v1645_v25 }
 0x1c9   : > { %v702_v15 = vpack.c.bf16 %v694_v13, %v694_v13  ;;  %v768_v31 = vmul.f32 %v2070_v27, %v2062_v20  ;;  %v1649_v32 = vpop.eup %1648  ;;  %vm2075_vm8 = vmor %vm727_vm4, %vm728_vm5  ;;  %vm773_vm13 = vweird.f32 %v2070_v27  ;;  %v808_v13 = vand.u32 2147483648, %v2068_v24 }
 0x1ca   : > { %713 = vst.msk [vmem:[%s2019_s23 + $0x1c] sm:$0xf] %vm705_vm3, %v704_v14  ;;  %v724_v34 = vsub.f32 1.0, %v723_v29  ;;  %v738_v36 = vmul.f32 %v1649_v32, %v715_v23  ;;  %vm743_vm7 = vweird.f32 %v1649_v32  ;;  %v1651_v43 = vpop.eup %1650  ;;  %vm2106_vm14 = vmor %vm772_vm12, %vm773_vm13  ;;  %v720_v23 = vld [vmem:[%s2058_s14 + $0x30] sm:$0xff]  ;;  %vm757_vm13 = vweird.f32 %v716_v35 }
 0x1cb   : > { %711 = vst.msk [vmem:[%s2019_s23 + $0x14] sm:$0xf] %vm705_vm3, %v702_v15  ;;  %1504 = vmatmul.msk.bf16.vlgmr.msrb.gmra.mxu1 %vm608_vm1, %v702_v15  ;;  %1506 = vmatmul.msk.bf16.vlgmr.msrb.gmra.mxu3 %vm608_vm1, %v704_v14  ;;  %v769_v41 = vsub.f32 1.0, %v768_v31  ;;  %vm2083_vm10 = vmor %vm742_vm6, %vm743_vm7  ;;  %v798_v57 = vmul.f32 %v1651_v43, %v2068_v24  ;;  %vm803_vm4 = vweird.f32 %v1651_v43  ;;  %v806_v15 = vand.u32 2147483647, %v2068_v24 }
 0x1cc   : > { %v725_v37 = vmul.f32 %v1645_v25, %v724_v34  ;;  %v739_v42 = vsub.f32 1.0, %v738_v36  ;;  %vm804_vm5 = vmor %vm802_vm2, %vm803_vm4  ;;  %v809_v19 = vor.u32 1.1754944e-38, %v808_v13  ;;  %1652 = vrcp.f32 %v720_v23  ;;  %v718_v34 = vld [vmem:[%s2058_s14 + $0x20] sm:$0xff] }
 0x1cd   : > { %v770_v55 = vmul.f32 %v2070_v27, %v769_v41  ;;  %v799_v3 = vsub.f32 1.0, %v798_v57  ;;  %vm807_vm6 = vcmp.eq.f32.partialorder %v806_v15, 8.507059e+37  ;;  %vm817_vm7 = vweird.f32 %v720_v23  ;;  %v1530_v13 = vld [vmem:[%s2283_s4] sm:$0xff] }
 0x1ce   : > { %v726_v44 = vadd.f32 %v1645_v25, %v725_v37  ;;  %v740_v47 = vmul.f32 %v1649_v32, %v739_v42  ;;  %1654 = vrcp.f32 %v718_v34  ;;  %v793_v45 = vand.u32 2147483648, %v718_v34 }
 0x1cf   : > { %v771_v0 = vadd.f32 %v2070_v27, %v770_v55  ;;  %v800_v10 = vmul.f32 %v1651_v43, %v799_v3  ;;  %1656 = vrcp.f32 %v716_v35  ;;  %v764_v57 = vor.u32 1.1754944e-38, %v763_v49 }
 0x1d0   : > { %v730_v54 = vsel %vm2075_vm8, %v1645_v25, %v726_v44  ;;  %v741_v56 = vadd.f32 %v1649_v32, %v740_v47  ;;  %v791_v44 = vand.u32 2147483647, %v718_v34 }
 0x1d1   : > { %v735_v61 = vsel %vm2079_vm9, %v734_v50, %v730_v54  ;;  %v775_v9 = vsel %vm2106_vm14, %v2070_v27, %v771_v0  ;;  %v801_v14 = vadd.f32 %v1651_v43, %v800_v10  ;;  %v794_v50 = vor.u32 1.1754944e-38, %v793_v45 }
 0x1d2   : > { %v745_v60 = vsel %vm2083_vm10, %v1649_v32, %v741_v56  ;;  %v861_v6 = vmul.f32 %v735_v61, %v735_v61  ;;  %v780_v12 = vsel %vm777_vm15, %v779_v8, %v775_v9  ;;  %v1653_v25 = vpop.eup %1652  ;;  %v853_v32 = vmul.f32 0.3989423, %v735_v61 }
 0x1d3   : > { %v750_v63 = vsel %vm2087_vm11, %v749_v53, %v745_v60  ;;  %v805_v20 = vsel %vm804_vm5, %v1651_v43, %v801_v14  ;;  %vm818_vm8 = vweird.f32 %v1653_v25  ;;  %v856_v42 = vmul.f32 0.3989423, %v780_v12 }
 0x1d4   : > { %v862_v2 = vmul.f32 %v750_v63, %v750_v63  ;;  %vm819_vm9 = vmor %vm817_vm7, %vm818_vm8  ;;  %v1655_v38 = vpop.eup %1654  ;;  %v854_v41 = vmul.f32 0.3989423, %v750_v63  ;;  %vm787_vm11 = vweird.f32 %v718_v34  ;;  %vm792_vm2 = vcmp.eq.f32.partialorder %v791_v44, 8.507059e+37 }
 0x1d5   : > { %v1657_v39 = vpop.eup %1656  ;;  %v783_v40 = vmul.f32 %v1655_v38, %v718_v34  ;;  %vm788_vm12 = vweird.f32 %v1655_v38  ;;  %vm762_vm5 = vcmp.eq.f32.partialorder %v761_v52, 8.507059e+37 }
 0x1d6   : > { %v753_v47 = vmul.f32 %v1657_v39, %v716_v35  ;;  %vm758_vm14 = vweird.f32 %v1657_v39  ;;  %vm789_vm15 = vmor %vm787_vm11, %vm788_vm12  ;;  %vm1182_vm11 = vcmask 130048   ;;  %vm1184_vm12 = vcmask 162816  }
 0x1d7   : > { %v784_v43 = vsub.f32 1.0, %v783_v40  ;;  %vm759_vm4 = vmor %vm757_vm13, %vm758_vm14  ;;  %vm1186_vm13 = vcmask 195584   ;;  %vm1188_vm14 = vcmask 228352  }
 0x1d8   : > { %v754_v51 = vsub.f32 1.0, %v753_v47 }
 0x1da   : > { %v755_v55 = vmul.f32 %v1657_v39, %v754_v51 }
 0x226   : > { %v2052_v16 = vpop.f32.mrf.mxu0 }
 0x22e   : > { %v1015_v17 = vpop.f32.mrf.mxu0 }
 0x22f   : > { %v864_v17 = vmul.f32 %v780_v12, %v780_v12 }
 0x235   : > { %v1051_v18 = vpop.f32.mrf.mxu2 }
 0x236   : > { %1155 = vrot.lane.b32.xlu2 %v1051_v18, %s1816_s16  ;;  %s1823_s16 = smov 28  }
 0x237   : > { %v1032_v21 = vpop.f32.mrf.mxu1 }
 0x238   : > { %1151 = vrot.lane.b32.xlu1 %v1032_v21, %s2258_s19  ;;  %v2116_v21 = vsel %vm807_vm6, %v809_v19, %v805_v20 }
 0x239   : > { %v866_v22 = vmul.f32 %v2116_v21, %v2116_v21 }
 0x23d   : > { %v1053_v26 = vpop.f32.mrf.mxu2 }
 0x23e   : > { %v1070_v28 = vpop.f32.mrf.mxu3  ;;  %v813_v26 = vmul.f32 %v1653_v25, %v720_v23 }
 0x23f   : > { %1159 = vrot.lane.b32.xlu0 %v1070_v28, %s1819_s21  ;;  %v1034_v30 = vpop.f32.mrf.mxu1  ;;  %v823_v28 = vand.u32 2147483648, %v720_v23 }
 0x240   : > { %v1089_v33 = vpop.f32.mrf.mxu0  ;;  %v814_v24 = vsub.f32 1.0, %v813_v26  ;;  %v821_v30 = vand.u32 2147483647, %v720_v23 }
 0x241   : > { %1163 = vrot.lane.b32.xlu2 %v1089_v33, %s1820_s24  ;;  %v824_v31 = vor.u32 1.1754944e-38, %v823_v28 }
 0x242   : > { %v815_v27 = vmul.f32 %v1653_v25, %v814_v24  ;;  %vm822_vm10 = vcmp.eq.f32.partialorder %v821_v30, 8.507059e+37 }
 0x244   : > { %v816_v29 = vadd.f32 %v1653_v25, %v815_v27 }
 0x245   : > { %v1127_v46 = vpop.f32.mrf.mxu2 }
 0x246   : > { %v1072_v48 = vpop.f32.mrf.mxu3  ;;  %v820_v33 = vsel %vm819_vm9, %v1653_v25, %v816_v29 }
 0x247   : > { %1171 = vrot.lane.b32.xlu0 %v1127_v46, %s1821_s25  ;;  %v825_v36 = vsel %vm822_vm10, %v824_v31, %v820_v33  ;;  %v721_v46 = vld [vmem:[%s2058_s14 + $0x38] sm:$0xff]  ;;  %v785_v48 = vmul.f32 %v1655_v38, %v784_v43  ;;  %vm1180_vm10 = vcmask 97280   ;;  %s1268_s25 = sshll.u32 %s2019_s23, 4  ;;  %s1696_s14 = scalar_lea.hbm %s2254_s7, 64  ;;  %s1269_s25 = int_to_ptr.vmem [resolvable:$true] %s1268_s25 }
 0x248   : > { %v1091_v58 = vpop.f32.mrf.mxu0  ;;  %v1108_v59 = vpop.f32.mrf.mxu1  ;;  %v867_v37 = vmul.f32 %v825_v36, %v825_v36  ;;  %1658 = vrcp.f32 %v721_v46  ;;  %v859_v54 = vmul.f32 0.3989423, %v825_v36  ;;  %vm832_vm6 = vweird.f32 %v721_v46 }
 0x249   : > { %1167 = vrot.lane.b32.xlu1 %v1108_v59, %s1822_s26  ;;  %v786_v53 = vadd.f32 %v1655_v38, %v785_v48  ;;  %v756_v59 = vadd.f32 %v1657_v39, %v755_v55  ;;  %v836_v4 = vand.u32 2147483647, %v721_v46  ;;  %s2136_s26 = sand.u32 1, %s1475_s11  }
 0x24a   : > { %s2261_s22 = scalar_lea.sflag [#allocation5], %s2136_s26 }
 0x24b   : > { %v790_v56 = vsel %vm789_vm15, %v1655_v38, %v786_v53  ;;  %v760_v62 = vsel %vm759_vm4, %v1657_v39, %v756_v59  ;;  %vm837_vm9 = vcmp.eq.f32.partialorder %v836_v4, 8.507059e+37 }
 0x24c   : > { %v795_v58 = vsel %vm792_vm2, %v794_v50, %v790_v56  ;;  %v765_v63 = vsel %vm762_vm5, %v764_v57, %v760_v62 }
 0x24d   : > { %v1129_v5 = vpop.f32.mrf.mxu2  ;;  %v857_v60 = vmul.f32 0.3989423, %v795_v58  ;;  %v863_v1 = vmul.f32 %v765_v63, %v765_v63  ;;  %v865_v9 = vmul.f32 %v795_v58, %v795_v58  ;;  %v855_v15 = vmul.f32 0.3989423, %v765_v63 }
 0x24e   : > { %v1146_v7 = vpop.f32.mrf.mxu3  ;;  %v1659_v61 = vpop.eup %1658 }
 0x24f   : > { %1175 = vrot.lane.b32.xlu2 %v1146_v7, %s1823_s16  ;;  %876 = vperm.xlu0 %1609, %v862_v2   ;;  %v828_v0 = vmul.f32 %v1659_v61, %v721_v46  ;;  %v838_v2 = vand.u32 2147483648, %v721_v46  ;;  %vm833_vm7 = vweird.f32 %v1659_v61  ;;  %v1531_v7 = vld [vmem:[%s2283_s4 + $0x8] sm:$0xff]  ;;  %s2260_s16 = sshll.u32 %s1806_s30, 5 }
 0x250   : > { %v1110_v11 = vpop.f32.mrf.mxu1  ;;  %vm834_vm8 = vmor %vm832_vm6, %vm833_vm7  ;;  %1221 = vmatpush.bf16.msra.mxu0 %v1531_v7  ;;  %s1267_s24 = scalar_lea.hbm %s2254_s7, %s2260_s16 }
 0x251   : > { %871 = vperm.xlu1 %1608, %v861_v6   ;;  %v829_v3 = vsub.f32 1.0, %v828_v0  ;;  %v839_v6 = vor.u32 1.1754944e-38, %v838_v2  ;;  %s1270_s12 = sshll.u32 %s1267_s24, 4  ;;  %s1271_s12 = int_to_ptr.hbm [resolvable:$true] %s1270_s12 }
 0x252   : > { %s1690_s19 = sshra.s32 %s1271_s12, 4  ;;  %s1691_s19 = int_to_ptr.hbm [resolvable:$true] %s1690_s19 }
 0x253   : > { %v830_v5 = vmul.f32 %v1659_v61, %v829_v3  ;;  %s1692_s11 = scalar_lea.hbm %s1691_s19, 32  ;;  %p1697_p1 = scmp.lt.s32.totalorder %s1691_s19, %s2254_s7 }
 0x254   : > { %1222 = vmatpush.bf16.msra.mxu0 %v1530_v13  ;;  %p1693_p12 = scmp.ne.s32.totalorder %s1691_s19, %s1692_s11  ;;  %p1698_p2 = scmp.lt.s32.totalorder %s1696_s14, %s1692_s11 }
 0x255   : > { %v831_v8 = vadd.f32 %v1659_v61, %v830_v5 }
 0x256   : > { %v1148_v18 = vpop.f32.mrf.mxu3  ;;  %p1694_p13 = pnand %p1693_p12, %p1912_p4  ;;  %p1699_p3 = por %p1698_p2, %p1697_p1 }
 0x257   : > { %901 = vperm.xlu0 %1609, %v867_v37   ;;  %881 = vperm.xlu2 %1610, %v863_v1   ;;  %v835_v10 = vsel %vm834_vm8, %v1659_v61, %v831_v8 }
 0x258   : > { %v840_v11 = vsel %vm837_vm9, %v839_v6, %v835_v10  ;;  %p1695_p0 = pneg %p1694_p13 }
 0x259   : > { %886 = vperm.xlu1 %1608, %v864_v17   ;;  %v860_v12 = vmul.f32 0.3989423, %v840_v11  ;;  %v868_v14 = vmul.f32 %v840_v11, %v840_v11  ;;  %v858_v17 = vmul.f32 0.3989423, %v2116_v21 }
 0x25a   : > { %p1700_p5 = pnand %p1699_p3, %p1695_p0 }
 0x25f   : > { %940 = vperm.xlu0 %1609, %v854_v41   ;;  %891 = vperm.xlu2 %1610, %v865_v9  }
 0x261   : > { %896 = vperm.xlu1 %1608, %v866_v22  }
 0x267   : > { %955 = vperm.xlu0 %1609, %v857_v60   ;;  %906 = vperm.xlu2 %1610, %v868_v14  }
 0x269   : > { %935 = vperm.xlu1 %1608, %v853_v32  }
 0x26f   : > { %970 = vperm.xlu0 %1609, %v860_v12   ;;  %945 = vperm.xlu2 %1610, %v855_v15  }
 0x271   : > { %950 = vperm.xlu1 %1608, %v856_v42  }
 0x277   : > { %960 = vperm.xlu2 %1610, %v858_v17  }
 0x279   : > { %965 = vperm.xlu1 %1608, %v859_v54  }
 0x290   : > { %v1156_v18 = vpop.permute.xlu2 %1155 }
 0x29b   : > { %v1164_v23 = vpop.permute.xlu2 %1163 }
 0x2a9   : > { %v1176_v29 = vpop.permute.xlu2 %1175 }
 0x2aa   : > { %v1152_v19 = vpop.permute.xlu1 %1151 }
 0x2ab   : > { %v1178_v22 = vsel %vm447_vm0, %v2052_v16, %v1152_v19  ;;  %v842_v16 = vlaneseq  ;;  %vm1211_vm0 = vcmask 261120  }
 0x2ac   : > { %v1179_v25 = vsel %vm608_vm1, %v1178_v22, %v1156_v18 }
 0x2ad   : > { %v843_v33 = vshrl.u32 %v842_v16, 7  ;;  %v848_v34 = vand.u32 127, %v842_v16 }
 0x2b1   : > { %v1160_v20 = vpop.permute.xlu0 %1159 }
 0x2b2   : > { %v1181_v26 = vsel %vm1180_vm10, %v1179_v25, %v1160_v20 }
 0x2b3   : > { %v1183_v24 = vsel %vm1182_vm11, %v1181_v26, %v1164_v23 }
 0x2b9   : > { %v1172_v27 = vpop.permute.xlu0 %1171 }
 0x2bb   : > { %v1168_v21 = vpop.permute.xlu1 %1167 }
 0x2bc   : > { %v1185_v28 = vsel %vm1184_vm12, %v1183_v24, %v1168_v21 }
 0x2bd   : > { %v1187_v30 = vsel %vm1186_vm13, %v1185_v28, %v1172_v27 }
 0x2be   : > { %v1189_v31 = vsel %vm1188_vm14, %v1187_v30, %v1176_v29 }
 0x2bf   : > { %v1190_v32 = vpack.c.bf16 %v1189_v31, %v1189_v31 }
 0x2c1   : > { %1515 = vmatmul.msk.bf16.vlgmr.msra.gmra.mxu0 %vm1211_vm0, %v1190_v32 }
 0x2c2   : > { %1703 = shalt.err (!%p1700_p5)
}
 0x2c3   : > { %s1824_s23 = smov 64   ;;  %s2284_s24 = smov 4   ;;  %v849_v35 = vsub.s32 %v843_v33, %v848_v34  ;;  %v872_v36 = vpop.permute.xlu1 %871  ;;  %v877_v44 = vpop.permute.xlu0 %876 }
 0x2c4   : > { %1535 = dma.vmem_to_hbm [thread:$0]  (%p1912_p4), %s1269_s25, 512, %s1271_s12, %s2261_s22, %s1824_s23, %s1824_s23, %s2284_s24   ;;  %v882_v49 = vpop.permute.xlu2 %881 }
 0x2c5   : > { %v850_v37 = vcvt.s32.f32 %v849_v35  ;;  %s2285_s0 = sshll.u32 %s2011_s20, 5  ;;  %s2286_s12 = sshll.u32 %s1806_s30, 5 }
 0x2c6   : > { %s2164_s1 = scalar_lea.vmem [#allocation6], %s2285_s0  ;;  %s1285_s25 = scalar_lea.hbm %s2255_s8, %s2286_s12 }
 0x2c7   : > { %v851_v38 = vmul.f32 -0.5, %v850_v37  ;;  %s1286_s11 = sshll.u32 %s2164_s1, 4  ;;  %s1288_s14 = sshll.u32 %s1285_s25, 4  ;;  %s1287_s11 = int_to_ptr.vmem [resolvable:$true] %s1286_s11  ;;  %s1289_s14 = int_to_ptr.hbm [resolvable:$true] %s1288_s14 }
 0x2c8   : > { %s1718_s21 = sshra.s32 %s1289_s14, 4  ;;  %s1724_s16 = scalar_lea.hbm %s2255_s8, 64  ;;  %s1719_s21 = int_to_ptr.hbm [resolvable:$true] %s1718_s21 }
 0x2c9   : > { %v852_v39 = vmul.f32 %v851_v38, %v850_v37  ;;  %s1720_s0 = scalar_lea.hbm %s1719_s21, 32  ;;  %p1725_p10 = scmp.lt.s32.totalorder %s1719_s21, %s2255_s8 }
 0x2ca   : > { %p1721_p6 = scmp.ne.s32.totalorder %s1719_s21, %s1720_s0  ;;  %p1726_p11 = scmp.lt.s32.totalorder %s1724_s16, %s1720_s0 }
 0x2cb   : > { %v887_v40 = vpop.permute.xlu1 %886  ;;  %v909_v41 = vmul.f32 %v872_v36, %v852_v39  ;;  %v910_v46 = vmul.f32 %v877_v44, %v852_v39  ;;  %v902_v54 = vpop.permute.xlu0 %901  ;;  %v911_v56 = vmul.f32 %v882_v49, %v852_v39 }
 0x2cc   : > { %v912_v45 = vmul.f32 %v887_v40, %v852_v39  ;;  %v915_v55 = vmul.f32 %v902_v54, %v852_v39  ;;  %v892_v58 = vpop.permute.xlu2 %891  ;;  %p1722_p7 = pnand %p1721_p6, %p1912_p4  ;;  %p1727_p12 = por %p1726_p11, %p1725_p10 }
 0x2cd   : > { %v917_v42 = vmul.f32 1.442695, %v909_v41  ;;  %v919_v50 = vmul.f32 1.442695, %v910_v46  ;;  %v913_v59 = vmul.f32 %v892_v58, %v852_v39  ;;  %v921_v63 = vmul.f32 1.442695, %v911_v56 }
 0x2ce   : > { %v923_v48 = vmul.f32 1.442695, %v912_v45  ;;  %v929_v57 = vmul.f32 1.442695, %v915_v55  ;;  %p1723_p9 = pneg %p1722_p7 }
 0x2cf   : > { %1660 = vpow2.f32 %v917_v42  ;;  %v925_v62 = vmul.f32 1.442695, %v913_v59 }
 0x2d0   : > { %1662 = vpow2.f32 %v923_v48  ;;  %p1728_p13 = pnand %p1727_p12, %p1723_p9 }
 0x2d1   : > { %1664 = vpow2.f32 %v919_v50 }
 0x2d2   : > { %1666 = vpow2.f32 %v929_v57 }
 0x2d3   : > { %v897_v43 = vpop.permute.xlu1 %896  ;;  %1668 = vpow2.f32 %v925_v62  ;;  %v941_v2 = vpop.permute.xlu0 %940 }
 0x2d4   : > { %v914_v5 = vmul.f32 %v897_v43, %v852_v39  ;;  %1670 = vpow2.f32 %v921_v63  ;;  %v907_v7 = vpop.permute.xlu2 %906 }
 0x2d5   : > { %v1661_v47 = vpop.eup %1660  ;;  %v916_v8 = vmul.f32 %v907_v7, %v852_v39 }
 0x2d6   : > { %v1663_v60 = vpop.eup %1662  ;;  %v927_v11 = vmul.f32 1.442695, %v914_v5 }
 0x2d7   : > { %v1665_v61 = vpop.eup %1664  ;;  %v931_v13 = vmul.f32 1.442695, %v916_v8 }
 0x2d8   : > { %v974_v3 = vmul.f32 %v1665_v61, %v941_v2  ;;  %v1667_v9 = vpop.eup %1666  ;;  %1672 = vpow2.f32 %v927_v11 }
 0x2d9   : > { %v1669_v10 = vpop.eup %1668  ;;  %1674 = vpow2.f32 %v931_v13 }
 0x2da   : > { %v982_v6 = vpack.c.bf16 %v974_v3, %v974_v3  ;;  %v1671_v17 = vpop.eup %1670 }
 0x2db   : > { %v936_v51 = vpop.permute.xlu1 %935  ;;  %v956_v15 = vpop.permute.xlu0 %955 }
 0x2dc   : > { %v973_v52 = vmul.f32 %v1661_v47, %v936_v51  ;;  %990 = vst.msk [vmem:[%s2164_s1 + $0x4] sm:$0xf] %vm705_vm3, %v982_v6  ;;  %v977_v18 = vmul.f32 %v1669_v10, %v956_v15  ;;  %v946_v22 = vpop.permute.xlu2 %945 }
 0x2dd   : > { %v975_v23 = vmul.f32 %v1671_v17, %v946_v22 }
 0x2de   : > { %v981_v53 = vpack.c.bf16 %v973_v52, %v973_v52  ;;  %v985_v20 = vpack.c.bf16 %v977_v18, %v977_v18  ;;  %v1673_v26 = vpop.eup %1672 }
 0x2df   : > { %v983_v25 = vpack.c.bf16 %v975_v23, %v975_v23  ;;  %v1675_v21 = vpop.eup %1674 }
 0x2e0   : > { %989 = vst.msk [vmem:[%s2164_s1] sm:$0xf] %vm705_vm3, %v981_v53 }
 0x2e1   : > { %993 = vst.msk [vmem:[%s2164_s1 + $0x10] sm:$0xf] %vm705_vm3, %v985_v20 }
 0x2e2   : > { %991 = vst.msk [vmem:[%s2164_s1 + $0x8] sm:$0xf] %vm705_vm3, %v983_v25 }
 0x2e3   : > { %v951_v0 = vpop.permute.xlu1 %950  ;;  %v971_v27 = vpop.permute.xlu0 %970 }
 0x2e4   : > { %v976_v1 = vmul.f32 %v1663_v60, %v951_v0  ;;  %v961_v24 = vpop.permute.xlu2 %960  ;;  %v980_v29 = vmul.f32 %v1675_v21, %v971_v27 }
 0x2e5   : > { %v978_v28 = vmul.f32 %v1673_v26, %v961_v24 }
 0x2e6   : > { %v984_v4 = vpack.c.bf16 %v976_v1, %v976_v1  ;;  %v988_v16 = vpack.c.bf16 %v980_v29, %v980_v29 }
 0x2e7   : > { %v986_v30 = vpack.c.bf16 %v978_v28, %v978_v28 }
 0x2e8   : > { %992 = vst.msk [vmem:[%s2164_s1 + $0xc] sm:$0xf] %vm705_vm3, %v984_v4 }
 0x2e9   : > { %994 = vst.msk [vmem:[%s2164_s1 + $0x14] sm:$0xf] %vm705_vm3, %v986_v30 }
 0x2ea   : > { %996 = vst.msk [vmem:[%s2164_s1 + $0x1c] sm:$0xf] %vm705_vm3, %v988_v16 }
 0x2eb   : > { %v966_v12 = vpop.permute.xlu1 %965 }
 0x2ec   : > { %v979_v14 = vmul.f32 %v1667_v9, %v966_v12 }
 0x2ee   : > { %v987_v19 = vpack.c.bf16 %v979_v14, %v979_v14 }
 0x2f0   : > { %995 = vst.msk [vmem:[%s2164_s1 + $0x18] sm:$0xf] %vm705_vm3, %v987_v19 }
 0x2f1   : > { %1731 = shalt.err (!%p1728_p13)
}
 0x2f2   : > { %s2287_s1 = scalar_lea.sflag [#allocation5], %s2136_s26  ;;  %s1519_s12 = sshll.u32 %s1806_s30, 3  ;;  %v1611_v31 = vld [vmem:[%s2252_s5] ss:$0 sm:$0xff] }
 0x2f3   : > { %1536 = dma.vmem_to_hbm [thread:$0]  (%p1912_p4), %s1287_s11, 512, %s1289_s14, %s2287_s1, %s1824_s23, %s1824_s23, %s2284_s24  }
 0x2f4   : > { %s1480_s19 = sshll.u32 %s2011_s20, 3  ;;  %s1251_s21 = scalar_lea.hbm %s2253_s6, %s1519_s12 }
 0x2f5   : > { %s381_s25 = scalar_lea.vmem [#allocation2], %s1480_s19  ;;  %s1255_s4 = sshll.u32 %s1251_s21, 4  ;;  %s1256_s4 = int_to_ptr.hbm [resolvable:$true] %s1255_s4 }
 0x2f6   : > { %s1253_s3 = sshll.u32 %s381_s25, 4  ;;  %s1230_s30 = scalar_lea.sflag [#allocation3], %s2011_s20  ;;  %s1254_s3 = int_to_ptr.vmem [resolvable:$true] %s1253_s3 }
 0x2f7   : > { %s1746_s26 = sshra.s32 %s1256_s4, 4  ;;  %s1752_s11 = scalar_lea.hbm %s2253_s6, 16  ;;  %s1747_s26 = int_to_ptr.hbm [resolvable:$true] %s1746_s26 }
 0x2f8   : > { %s1748_s23 = scalar_lea.hbm %s1747_s26, 8  ;;  %p1753_p3 = scmp.lt.s32.totalorder %s1747_s26, %s2253_s6 }
 0x2f9   : > { %p1749_p0 = scmp.ne.s32.totalorder %s1747_s26, %s1748_s23  ;;  %p1754_p5 = scmp.lt.s32.totalorder %s1752_s11, %s1748_s23 }
 0x2fb   : > { %p1750_p1 = pnand %p1749_p0, %p1912_p4  ;;  %p1755_p6 = por %p1754_p5, %p1753_p3 }
 0x2fd   : > { %p1751_p2 = pneg %p1750_p1 }
 0x2ff   : > { %p1756_p7 = pnand %p1755_p6, %p1751_p2 }
 0x33e   : > { %v1224_v32 = vpop.f32.mrf.mxu0 }
 0x33f   : > { %v1225_v33 = vadd.f32 %v1611_v31, %v1224_v32 }
 0x341   : > { %1228 = vst.msk [vmem:[%s381_s25] sm:$0xff] %vm1211_vm0, %v1225_v33 }
 0x342   : > { %1759 = shalt.err (!%p1756_p7)
}
 0x343   : > { %1534 = dma.vmem_to_hbm [thread:$0]  (%p1912_p4), %s1254_s3, 128, %s1256_s4, %s1230_s30  }
 0x346   : > { %v1226_v34 = vpop.f32.mrf.mxu0 }
 0x347 PF: > { %p1550_p9 = scmp.ge.s32.totalorder %s1814_s10, 2  ;;  %s1303_s20 = sand.u32 1, %s1794_s27  }
 0x348   : > { %s1304_s12 = scalar_lea.sflag [#allocation3], %s1303_s20 }
 0x349   : > { %p1541_p10 = pnand %p1550_p9, %p1921_p8 }
 0x34b   : > { %p1542_p11 = pneg %p1541_p10 }
 0x34d   : > { %1785 = dma.done.wait (%p1542_p11), %s1304_s12, 128  }
 0x34e   : > { %1787 = vsyncadd (%p1542_p11), %s1304_s12, 4294967168  ;;  %s2288_s19 = sadd.s32 4294967294, %s1814_s10  }
 0x34f   : > { %s1313_s22 = sand.u32 1, %s2288_s19  }
 0x350   : > { %s1314_s21 = scalar_lea.sflag [#allocation5], %s1313_s22 }
 0x351   : > { %1789 = dma.done.wait (%p1542_p11), %s1314_s21, 1024  }
 0x352   : > { %1791 = vsyncadd (%p1542_p11), %s1314_s21, 4294966272  ;;  %s25_s10 = sadd.s32 1, %s1814_s10   ;;  %s2289_s27 = smov %s1798_s28 }
 0x353   : > { %p22_p4 = scmp.ge.s32.totalorder %s25_s10, 4   ;;  %s2290_s28 = smov %s1802_s29 }
 0x354   : > { %s2291_s29 = smov %s1927_s18  ;;  %s2292_s30 = smov %s1810_s9 }
 0x355   : > { %s2293_s9 = smov %s2295_s13  ;;  %24 = sbr.rel (!%p22_p4) target bundleno = 12 (0xc), region = 120 }
 0x35a   :  { %1330 = vsyncpa [#allocation3], 1 }
 0x35b   :  { %1332 = vsyncpa [#allocation3 + $0x1], 1 }
 0x35c   :  { %1333 = vsyncpa [#allocation5], 1 }
 0x35d   :  { %1335 = vsyncpa [#allocation5 + $0x1], 1 }

</bundles_post_ra>
